<compile_context>
chip_gen: v7x
topology: tpu7x:2x2x1
jax: 0.10.0
libtpu: 0.0.40
codegen_flags: <defaults>
</compile_context>

<pallas_src>
import functools

import numpy as np

import jax
import jax.numpy as jnp
from jax.experimental import pallas as pl
from jax.experimental.pallas import tpu as pltpu


# MACs per image of the folded formulation (advisory cost estimate only).
_MACS_PER_IMAGE = (8 * 48 * 256            # conv1   (y-taps folded along K)
                   + 3 * 4 * 256 * 256     # conv2   (3 y-taps)
                   + 3 * 4 * 256 * 256     # deconv1 (phase decomposition)
                   + 2048 * 256)           # deconv2 (K-stacked)


def _round_up(x, m):
    return -(-x // m) * m


def _choose_nb(n):
    """Batch-tile (matmul M) selection.

    * multiples of 16 so every bf16 scratch row-block slice is tile aligned,
    * up to 256 rows (native MXU M on v6e/v7x; v5e simply takes two passes),
    * >= 2 grid steps once the batch is big enough so the "parallel" batch
      axis has work for both v7x TensorCores.
    """
    n16 = _round_up(max(n, 1), 16)
    if n16 <= 128:
        return n16
    if n16 <= 512:
        return _round_up(n16 // 2, 16)
    return 256


# ---------------------------------------------------------------------------
# Fused kernel: all four layers for one batch tile of `nb` images.
# Row convention for tall activations: one row per (y-position, image), image
# index fastest (blocks of nb rows per y-position).  Columns fold
# (x-position, channel) -> 256 lanes.
# ---------------------------------------------------------------------------
def _mae_fused_kernel(x_ref, k1_ref, k2_ref, k3_ref, w4_ref, b_ref,
                      o_ref, h1_ref, h2_ref, *, nb):
    f32 = jnp.float32
    bf16 = jnp.bfloat16

    def mm(a, w):
        return jnp.dot(a, w, preferred_element_type=f32)

    b1 = b_ref[0:1, :]
    b2 = b_ref[1:2, :]
    b3 = b_ref[2:3, :]
    b4 = b_ref[3:4, :]

    # Zero "padding" row-blocks of the persistent scratch (per-core, per-step;
    # see NOTE at the top of the file).
    zpad = jnp.zeros((nb, 256), bf16)
    h1_ref[0:nb, :] = zpad                    # h1 row y = -1
    h2_ref[4 * nb:5 * nb, :] = zpad           # h2 row t = 4

    # ---- encoder conv1: 1x16x16 -> 32x8x8 (k3, s2, p1) + ReLU -------------
    # x_ref columns concatenate the three y-taps (dy=0,1,2) along K; k1_ref
    # folds y-tap + x-axis conv + output channels.  h1 rows are written in
    # slot order (1,3,5,7,0,2,4,6) so conv2's taps become contiguous blocks.
    a1 = mm(x_ref[...], k1_ref[...]) + b1                      # (8*nb, 256) f32
    h1_ref[nb:9 * nb, :] = jnp.maximum(a1, 0.0).astype(bf16)

    # ---- encoder conv2: 32x8x8 -> 64x4x4 (k3, s2, p1) + ReLU --------------
    a_tap = h1_ref[0:4 * nb, :]               # h1 rows 2t-1 (t = 0..3)
    c_tap = h1_ref[nb:5 * nb, :]              # h1 rows 2t+1
    b_tap = h1_ref[5 * nb:9 * nb, :]          # h1 rows 2t
    a2 = mm(a_tap, k2_ref[0]) + mm(b_tap, k2_ref[1]) + mm(c_tap, k2_ref[2]) + b2
    h2_ref[0:4 * nb, :] = jnp.maximum(a2, 0.0).astype(bf16)

    # ---- decoder deconv1: 64x4x4 -> 32x8x8 (s2, p1, op1) + ReLU -----------
    # Sub-pixel (phase) decomposition: even output rows use ky=1, odd rows ky=2/ky=0.
    cur = h2_ref[0:4 * nb, :]                 # h2 rows t
    nxt = h2_ref[nb:5 * nb, :]                # h2 rows t+1 (zero block at t = 3)
    h3_even = jnp.maximum(mm(cur, k3_ref[1]) + b3, 0.0).astype(bf16)          # u = 2t
    h3_odd = jnp.maximum(mm(cur, k3_ref[2]) + mm(nxt, k3_ref[0]) + b3,
                         0.0).astype(bf16)                                    # u = 2t+1

    # ---- decoder deconv2 + Sigmoid: 32x8x8 -> 1x16x16 ---------------------
    # Lane-concatenate the eight h3 row-blocks (u = 0,2,4,6,1,3,5,7) into a
    # single (nb, 2048) LHS and do ONE K-stacked matmul: accumulation happens
    # inside the MXU instead of a serial 8-pop VPU add chain.
    h3_cat = jnp.concatenate(
        [h3_even[t * nb:(t + 1) * nb, :] for t in range(4)]
        + [h3_odd[t * nb:(t + 1) * nb, :] for t in range(4)], axis=1)
    acc = mm(h3_cat, w4_ref[...]) + b4                         # (nb, 256) f32
    sig = pl.reciprocal(1.0 + jnp.exp(-acc), approx=True)      # EUP exp + EUP recip
    o_ref[...] = sig.astype(o_ref.dtype)


# ---------------------------------------------------------------------------
# Host-side weight folding (one-time): conv taps + channels -> dense matmuls
# ---------------------------------------------------------------------------
def _sel_conv(w_in, w_out, stride):
    """S[x_in, x_out, kx] = 1 iff x_in == stride*x_out + kx - 1 (pad=1, k=3)."""
    s = np.zeros((w_in, w_out, 3), np.float32)
    for xo in range(w_out):
        for k in range(3):
            xi = stride * xo + k - 1
            if 0 <= xi < w_in:
                s[xi, xo, k] = 1.0
    return s


def _sel_deconv(w_in, w_out):
    """S[x_in, x_out, kx] = 1 iff x_out == 2*x_in - 1 + kx (stride 2, pad 1, op 1)."""
    s = np.zeros((w_in, w_out, 3), np.float32)
    for xi in range(w_in):
        for k in range(3):
            xo = 2 * xi - 1 + k
            if 0 <= xo < w_out:
                s[xi, xo, k] = 1.0
    return s


def build_fused_params(params):
    """Fold each layer's x-axis convolution + channels into lane-dense matmul
    weights (bf16) and 256-wide bias rows (f32). Specialised to 1x16x16 inputs."""
    bf16 = jnp.bfloat16
    w1, w2 = params["enc1_w"], params["enc2_w"]      # (32,1,3,3), (64,32,3,3)
    w3, w4 = params["dec1_w"], params["dec2_w"]      # (64,32,3,3), (32,1,3,3)

    s1 = _sel_conv(16, 8, 2)                          # [x_in, x1, kx]
    k1 = jnp.concatenate(                             # (48, 256): K folds (dy, x_in)
        [jnp.einsum("iok,ck->ioc", s1, w1[:, 0, dy, :]).reshape(16, 256)
         for dy in range(3)], axis=0)
    s2 = _sel_conv(8, 4, 2)                           # [x1, x2, kx]
    k2 = jnp.stack([jnp.einsum("iok,dck->icod", s2, w2[:, :, dy, :]).reshape(256, 256)
                    for dy in range(3)])
    s3 = _sel_deconv(4, 8)                            # [x2, x3, kx]
    k3 = jnp.stack([jnp.einsum("iok,cdk->icod", s3, w3[:, :, ky, :]).reshape(256, 256)
                    for ky in range(3)])
    s4 = _sel_deconv(8, 16)                           # [x3, s, kx]  (also [u, r, ky])
    w4_u = [jnp.einsum("xsk,ry,cyk->xcrs", s4, s4[u], w4[:, 0]).reshape(256, 256)
            for u in range(8)]
    # K-stacked deconv2 weight; row-block order matches the kernel's h3_cat
    # lane order: even output rows u = 0,2,4,6 then odd rows u = 1,3,5,7.
    w4s = jnp.concatenate([w4_u[u] for u in (0, 2, 4, 6, 1, 3, 5, 7)], axis=0)

    bias = jnp.stack([jnp.tile(params["enc1_b"], 8),
                      jnp.tile(params["enc2_b"], 4),
                      jnp.tile(params["dec1_b"], 8),
                      jnp.tile(params["dec2_b"], 256)]).astype(jnp.float32)

    return {"k1": k1.astype(bf16), "k2": k2.astype(bf16),
            "k3": k3.astype(bf16), "w4": w4s.astype(bf16), "bias": bias}


# ---------------------------------------------------------------------------
# Input row-block preparation (pure layout plumbing, fused by XLA)
# ---------------------------------------------------------------------------
_SLOTS = np.array([1, 3, 5, 7, 0, 2, 4, 6])  # h1 row order produced by the kernel


def _prepare_inputs(x_nchw, nb):
    """Lane-dense (g*8*nb, 48) bf16 slab whose 48 columns concatenate the three
    conv1 y-taps (dy = 0, 1, 2) of the 16 input columns."""
    n = x_nchw.shape[0]
    g = n // nb
    x2d = x_nchw[:, 0, :, :]                                  # (N, 16, 16)
    xpad = jnp.pad(x2d, ((0, 0), (1, 1), (0, 0)))             # rows -1 .. 16
    planes = []
    for dy in range(3):
        rows = xpad[:, 2 * _SLOTS + dy, :]                    # (N, 8, 16): x[2m+dy-1]
        rows = rows.reshape(g, nb, 8, 16).transpose(0, 2, 1, 3).reshape(g, 8 * nb, 16)
        planes.append(rows)
    xblk = jnp.concatenate(planes, axis=-1)                   # (g, 8*nb, 48)
    return xblk.reshape(g * 8 * nb, 48).astype(jnp.bfloat16)


# ---------------------------------------------------------------------------
# Forward pass
# ---------------------------------------------------------------------------
@jax.jit
def mae_forward(x_nchw, fused):
    n, c, h, w = x_nchw.shape
    assert (c, h, w) == (1, 16, 16), "kernel is specialised to 1x16x16 inputs"
    nb = _choose_nb(n)
    g = -(-n // nb)
    n_pad = g * nb
    if n_pad != n:
        x_nchw = jnp.pad(x_nchw, ((0, n_pad - n), (0, 0), (0, 0), (0, 0)))
    xblk = _prepare_inputs(x_nchw, nb)

    weight_bytes = (48 * 256 + 6 * 256 * 256 + 2048 * 256) * 2 + 4 * 256 * 4
    cost = pl.CostEstimate(flops=2 * _MACS_PER_IMAGE * n_pad,
                           transcendentals=n_pad * 256,
                           bytes_accessed=xblk.size * 2 + n_pad * 256 * 2 + weight_bytes)

    out = pl.pallas_call(
        functools.partial(_mae_fused_kernel, nb=nb),
        out_shape=jax.ShapeDtypeStruct((n_pad, 256), jnp.bfloat16),
        grid=(g,),
        in_specs=[
            pl.BlockSpec((8 * nb, 48), lambda b: (b, 0)),      # conv1 y-tap slab
            pl.BlockSpec((48, 256), lambda b: (0, 0)),         # K1 (VMEM resident)
            pl.BlockSpec((3, 256, 256), lambda b: (0, 0, 0)),  # K2
            pl.BlockSpec((3, 256, 256), lambda b: (0, 0, 0)),  # K3
            pl.BlockSpec((2048, 256), lambda b: (0, 0)),       # W4 (K-stacked)
            pl.BlockSpec((4, 256), lambda b: (0, 0)),          # biases
        ],
        out_specs=pl.BlockSpec((nb, 256), lambda b: (b, 0)),
        scratch_shapes=[
            pltpu.VMEM((9 * nb, 256), jnp.bfloat16),   # h1 rows (+ zero pad block)
            pltpu.VMEM((5 * nb, 256), jnp.bfloat16),   # h2 rows (+ zero pad block)
        ],
        compiler_params=pltpu.CompilerParams(dimension_semantics=("parallel",)),
        cost_estimate=cost,
    )(xblk, fused["k1"], fused["k2"], fused["k3"], fused["w4"], fused["bias"])

    out = out[:n].reshape(n, 16, 16).astype(jnp.float32)   # columns are (row, col)
    return out[:, None, :, :]


# ---------------------------------------------------------------------------
# Pure-JAX reference (PyTorch semantics) and parameter init
# ---------------------------------------------------------------------------
def mae_reference(x, params):
    dn = ("NCHW", "OIHW", "NCHW")
    h = jax.lax.conv_general_dilated(x, params["enc1_w"], (2, 2), ((1, 1), (1, 1)),
                                     dimension_numbers=dn)
    h = jax.nn.relu(h + params["enc1_b"][None, :, None, None])
    h = jax.lax.conv_general_dilated(h, params["enc2_w"], (2, 2), ((1, 1), (1, 1)),
                                     dimension_numbers=dn)
    h = jax.nn.relu(h + params["enc2_b"][None, :, None, None])
    w = jnp.transpose(params["dec1_w"], (1, 0, 2, 3))[:, :, ::-1, ::-1]
    h = jax.lax.conv_general_dilated(h, w, (1, 1), ((1, 2), (1, 2)),
                                     lhs_dilation=(2, 2), dimension_numbers=dn)
    h = jax.nn.relu(h + params["dec1_b"][None, :, None, None])
    w = jnp.transpose(params["dec2_w"], (1, 0, 2, 3))[:, :, ::-1, ::-1]
    h = jax.lax.conv_general_dilated(h, w, (1, 1), ((1, 2), (1, 2)),
                                     lhs_dilation=(2, 2), dimension_numbers=dn)
    h = h + params["dec2_b"][None, :, None, None]
    return jax.nn.sigmoid(h)


def init_params(key):
    """PyTorch-style uniform(-1/sqrt(fan_in), 1/sqrt(fan_in)) init."""
    def uinit(k, shape, fan_in):
        bound = fan_in ** -0.5
        return jax.random.uniform(k, shape, jnp.float32, -bound, bound)

    ks = jax.random.split(key, 8)
    return {
        "enc1_w": uinit(ks[0], (32, 1, 3, 3), 1 * 9),
        "enc1_b": uinit(ks[1], (32,), 1 * 9),
        "enc2_w": uinit(ks[2], (64, 32, 3, 3), 32 * 9),
        "enc2_b": uinit(ks[3], (64,), 32 * 9),
        "dec1_w": uinit(ks[4], (64, 32, 3, 3), 64 * 9),
        "dec1_b": uinit(ks[5], (32,), 64 * 9),
        "dec2_w": uinit(ks[6], (32, 1, 3, 3), 32 * 9),
        "dec2_b": uinit(ks[7], (1,), 32 * 9),
    }


if __name__ == "__main__":
    key = jax.random.PRNGKey(0)
    pkey, xkey = jax.random.split(key)
    params = init_params(pkey)
    fused = build_fused_params(params)

    batch = 16
    x = jax.random.uniform(xkey, (batch, 1, 16, 16), jnp.float32)

    out = jax.block_until_ready(mae_forward(x, fused))

    assert out.shape == (batch, 1, 16, 16), out.shape
    assert bool(jnp.all(jnp.isfinite(out)))
    assert bool(jnp.all((out >= 0.0) & (out <= 1.0 + 1e-2)))   # sigmoid output range

    ref = mae_reference(x, params)
    max_err = float(jnp.max(jnp.abs(out - ref)))
    assert max_err < 5e-2, f"mismatch vs reference: {max_err}"

    print("KERNEL_OK")
</pallas_src>

<mosaic_0001>
module attributes {stable_mosaic.version = 11 : i64} {
  func.func @_mae_fused_kernel(%arg0: i32, %arg1: memref<128x48xbf16, #tpu.memory_space<vmem>>, %arg2: memref<48x256xbf16, #tpu.memory_space<vmem>>, %arg3: memref<3x256x256xbf16, #tpu.memory_space<vmem>>, %arg4: memref<3x256x256xbf16, #tpu.memory_space<vmem>>, %arg5: memref<2048x256xbf16, #tpu.memory_space<vmem>>, %arg6: memref<4x256xf32, #tpu.memory_space<vmem>>, %arg7: memref<16x256xbf16, #tpu.memory_space<vmem>>, %arg8: memref<144x256xbf16, #tpu.memory_space<vmem>>, %arg9: memref<80x256xbf16, #tpu.memory_space<vmem>>) attributes {dimension_semantics = [#tpu.dimension_semantics<parallel>], iteration_bounds = array<i64: 1>, scalar_prefetch = 0 : i64, scratch_operands = 2 : i64, tpu.core_type = #tpu.core_type<tc>, window_params = [{transform_indices = @transform_0, window_bounds = array<i64: 128, 48>}, {pipeline_mode = #tpu.pipeline_mode<synchronous>, transform_indices = @transform_1, window_bounds = array<i64: 48, 256>}, {pipeline_mode = #tpu.pipeline_mode<synchronous>, transform_indices = @transform_2, window_bounds = array<i64: 3, 256, 256>}, {pipeline_mode = #tpu.pipeline_mode<synchronous>, transform_indices = @transform_3, window_bounds = array<i64: 3, 256, 256>}, {pipeline_mode = #tpu.pipeline_mode<synchronous>, transform_indices = @transform_4, window_bounds = array<i64: 2048, 256>}, {pipeline_mode = #tpu.pipeline_mode<synchronous>, transform_indices = @transform_5, window_bounds = array<i64: 4, 256>}, {transform_indices = @transform_6, window_bounds = array<i64: 16, 256>}]} {
    %c0 = arith.constant 0 : index
    %c0_0 = arith.constant 0 : index
    %0 = vector.load %arg6[%c0, %c0_0] : memref<4x256xf32, #tpu.memory_space<vmem>>, vector<1x256xf32>
    %c1 = arith.constant 1 : index
    %c0_1 = arith.constant 0 : index
    %1 = vector.load %arg6[%c1, %c0_1] : memref<4x256xf32, #tpu.memory_space<vmem>>, vector<1x256xf32>
    %c2 = arith.constant 2 : index
    %c0_2 = arith.constant 0 : index
    %2 = vector.load %arg6[%c2, %c0_2] : memref<4x256xf32, #tpu.memory_space<vmem>>, vector<1x256xf32>
    %c3 = arith.constant 3 : index
    %c0_3 = arith.constant 0 : index
    %3 = vector.load %arg6[%c3, %c0_3] : memref<4x256xf32, #tpu.memory_space<vmem>>, vector<1x256xf32>
    %cst = arith.constant 0.000000e+00 : bf16
    %4 = vector.broadcast %cst : bf16 to vector<16x256xbf16>
    %c0_4 = arith.constant 0 : index
    %c0_5 = arith.constant 0 : index
    %5 = vector.load %arg8[%c0_4, %c0_5] : memref<144x256xbf16, #tpu.memory_space<vmem>>, vector<16x256xbf16>
    tpu.vector_store %arg8[%c0_4, %c0_5], %4 {strides = array<i32>} : memref<144x256xbf16, #tpu.memory_space<vmem>>, vector<16x256xbf16>,
    %c64 = arith.constant 64 : index
    %c0_6 = arith.constant 0 : index
    %6 = vector.load %arg9[%c64, %c0_6] : memref<80x256xbf16, #tpu.memory_space<vmem>>, vector<16x256xbf16>
    tpu.vector_store %arg9[%c64, %c0_6], %4 {strides = array<i32>} : memref<80x256xbf16, #tpu.memory_space<vmem>>, vector<16x256xbf16>,
    %c0_7 = arith.constant 0 : index
    %c0_8 = arith.constant 0 : index
    %7 = vector.load %arg1[%c0_7, %c0_8] : memref<128x48xbf16, #tpu.memory_space<vmem>>, vector<128x48xbf16>
    %c0_9 = arith.constant 0 : index
    %c0_10 = arith.constant 0 : index
    %8 = vector.load %arg2[%c0_9, %c0_10] : memref<48x256xbf16, #tpu.memory_space<vmem>>, vector<48x256xbf16>
    %cst_11 = arith.constant dense<0.000000e+00> : vector<128x256xf32>
    %9 = tpu.matmul %7, %8, %cst_11 {dimension_numbers = #tpu.dot_dimension_numbers<[1], [0], [0], [1], [0, 0, 1, 1], [], []>} : vector<128x48xbf16>, vector<48x256xbf16>, vector<128x256xf32> -> vector<128x256xf32>
    %10 = vector.broadcast %0 : vector<1x256xf32> to vector<128x256xf32>
    %11 = arith.addf %9, %10 : vector<128x256xf32>
    %cst_12 = arith.constant 0.000000e+00 : f32
    %12 = vector.broadcast %cst_12 : f32 to vector<128x256xf32>
    %13 = arith.maximumf %11, %12 : vector<128x256xf32>
    %14 = arith.truncf %13 : vector<128x256xf32> to vector<128x256xbf16>
    %c16 = arith.constant 16 : index
    %c0_13 = arith.constant 0 : index
    %15 = vector.load %arg8[%c16, %c0_13] : memref<144x256xbf16, #tpu.memory_space<vmem>>, vector<128x256xbf16>
    tpu.vector_store %arg8[%c16, %c0_13], %14 {strides = array<i32>} : memref<144x256xbf16, #tpu.memory_space<vmem>>, vector<128x256xbf16>,
    %c0_14 = arith.constant 0 : index
    %c0_15 = arith.constant 0 : index
    %16 = vector.load %arg8[%c0_14, %c0_15] : memref<144x256xbf16, #tpu.memory_space<vmem>>, vector<64x256xbf16>
    %c16_16 = arith.constant 16 : index
    %c0_17 = arith.constant 0 : index
    %17 = vector.load %arg8[%c16_16, %c0_17] : memref<144x256xbf16, #tpu.memory_space<vmem>>, vector<64x256xbf16>
    %c80 = arith.constant 80 : index
    %c0_18 = arith.constant 0 : index
    %18 = vector.load %arg8[%c80, %c0_18] : memref<144x256xbf16, #tpu.memory_space<vmem>>, vector<64x256xbf16>
    %c0_19 = arith.constant 0 : index
    %c0_20 = arith.constant 0 : index
    %c0_21 = arith.constant 0 : index
    %19 = vector.load %arg3[%c0_19, %c0_20, %c0_21] : memref<3x256x256xbf16, #tpu.memory_space<vmem>>, vector<1x256x256xbf16>
    %20 = vector.shape_cast %19 : vector<1x256x256xbf16> to vector<256x256xbf16>
    %cst_22 = arith.constant dense<0.000000e+00> : vector<64x256xf32>
    %21 = tpu.matmul %16, %20, %cst_22 {dimension_numbers = #tpu.dot_dimension_numbers<[1], [0], [0], [1], [0, 0, 1, 1], [], []>} : vector<64x256xbf16>, vector<256x256xbf16>, vector<64x256xf32> -> vector<64x256xf32>
    %c1_23 = arith.constant 1 : index
    %c0_24 = arith.constant 0 : index
    %c0_25 = arith.constant 0 : index
    %22 = vector.load %arg3[%c1_23, %c0_24, %c0_25] : memref<3x256x256xbf16, #tpu.memory_space<vmem>>, vector<1x256x256xbf16>
    %23 = vector.shape_cast %22 : vector<1x256x256xbf16> to vector<256x256xbf16>
    %cst_26 = arith.constant dense<0.000000e+00> : vector<64x256xf32>
    %24 = tpu.matmul %18, %23, %cst_26 {dimension_numbers = #tpu.dot_dimension_numbers<[1], [0], [0], [1], [0, 0, 1, 1], [], []>} : vector<64x256xbf16>, vector<256x256xbf16>, vector<64x256xf32> -> vector<64x256xf32>
    %25 = arith.addf %21, %24 : vector<64x256xf32>
    %c2_27 = arith.constant 2 : index
    %c0_28 = arith.constant 0 : index
    %c0_29 = arith.constant 0 : index
    %26 = vector.load %arg3[%c2_27, %c0_28, %c0_29] : memref<3x256x256xbf16, #tpu.memory_space<vmem>>, vector<1x256x256xbf16>
    %27 = vector.shape_cast %26 : vector<1x256x256xbf16> to vector<256x256xbf16>
    %cst_30 = arith.constant dense<0.000000e+00> : vector<64x256xf32>
    %28 = tpu.matmul %17, %27, %cst_30 {dimension_numbers = #tpu.dot_dimension_numbers<[1], [0], [0], [1], [0, 0, 1, 1], [], []>} : vector<64x256xbf16>, vector<256x256xbf16>, vector<64x256xf32> -> vector<64x256xf32>
    %29 = arith.addf %25, %28 : vector<64x256xf32>
    %30 = vector.broadcast %1 : vector<1x256xf32> to vector<64x256xf32>
    %31 = arith.addf %29, %30 : vector<64x256xf32>
    %cst_31 = arith.constant 0.000000e+00 : f32
    %32 = vector.broadcast %cst_31 : f32 to vector<64x256xf32>
    %33 = arith.maximumf %31, %32 : vector<64x256xf32>
    %34 = arith.truncf %33 : vector<64x256xf32> to vector<64x256xbf16>
    %c0_32 = arith.constant 0 : index
    %c0_33 = arith.constant 0 : index
    %35 = vector.load %arg9[%c0_32, %c0_33] : memref<80x256xbf16, #tpu.memory_space<vmem>>, vector<64x256xbf16>
    tpu.vector_store %arg9[%c0_32, %c0_33], %34 {strides = array<i32>} : memref<80x256xbf16, #tpu.memory_space<vmem>>, vector<64x256xbf16>,
    %c0_34 = arith.constant 0 : index
    %c0_35 = arith.constant 0 : index
    %36 = vector.load %arg9[%c0_34, %c0_35] : memref<80x256xbf16, #tpu.memory_space<vmem>>, vector<64x256xbf16>
    %c16_36 = arith.constant 16 : index
    %c0_37 = arith.constant 0 : index
    %37 = vector.load %arg9[%c16_36, %c0_37] : memref<80x256xbf16, #tpu.memory_space<vmem>>, vector<64x256xbf16>
    %c1_38 = arith.constant 1 : index
    %c0_39 = arith.constant 0 : index
    %c0_40 = arith.constant 0 : index
    %38 = vector.load %arg4[%c1_38, %c0_39, %c0_40] : memref<3x256x256xbf16, #tpu.memory_space<vmem>>, vector<1x256x256xbf16>
    %39 = vector.shape_cast %38 : vector<1x256x256xbf16> to vector<256x256xbf16>
    %cst_41 = arith.constant dense<0.000000e+00> : vector<64x256xf32>
    %40 = tpu.matmul %36, %39, %cst_41 {dimension_numbers = #tpu.dot_dimension_numbers<[1], [0], [0], [1], [0, 0, 1, 1], [], []>} : vector<64x256xbf16>, vector<256x256xbf16>, vector<64x256xf32> -> vector<64x256xf32>
    %41 = vector.broadcast %2 : vector<1x256xf32> to vector<64x256xf32>
    %42 = arith.addf %40, %41 : vector<64x256xf32>
    %cst_42 = arith.constant 0.000000e+00 : f32
    %43 = vector.broadcast %cst_42 : f32 to vector<64x256xf32>
    %44 = arith.maximumf %42, %43 : vector<64x256xf32>
    %45 = arith.truncf %44 : vector<64x256xf32> to vector<64x256xbf16>
    %c2_43 = arith.constant 2 : index
    %c0_44 = arith.constant 0 : index
    %c0_45 = arith.constant 0 : index
    %46 = vector.load %arg4[%c2_43, %c0_44, %c0_45] : memref<3x256x256xbf16, #tpu.memory_space<vmem>>, vector<1x256x256xbf16>
    %47 = vector.shape_cast %46 : vector<1x256x256xbf16> to vector<256x256xbf16>
    %cst_46 = arith.constant dense<0.000000e+00> : vector<64x256xf32>
    %48 = tpu.matmul %36, %47, %cst_46 {dimension_numbers = #tpu.dot_dimension_numbers<[1], [0], [0], [1], [0, 0, 1, 1], [], []>} : vector<64x256xbf16>, vector<256x256xbf16>, vector<64x256xf32> -> vector<64x256xf32>
    %c0_47 = arith.constant 0 : index
    %c0_48 = arith.constant 0 : index
    %c0_49 = arith.constant 0 : index
    %49 = vector.load %arg4[%c0_47, %c0_48, %c0_49] : memref<3x256x256xbf16, #tpu.memory_space<vmem>>, vector<1x256x256xbf16>
    %50 = vector.shape_cast %49 : vector<1x256x256xbf16> to vector<256x256xbf16>
    %cst_50 = arith.constant dense<0.000000e+00> : vector<64x256xf32>
    %51 = tpu.matmul %37, %50, %cst_50 {dimension_numbers = #tpu.dot_dimension_numbers<[1], [0], [0], [1], [0, 0, 1, 1], [], []>} : vector<64x256xbf16>, vector<256x256xbf16>, vector<64x256xf32> -> vector<64x256xf32>
    %52 = arith.addf %48, %51 : vector<64x256xf32>
    %53 = vector.broadcast %2 : vector<1x256xf32> to vector<64x256xf32>
    %54 = arith.addf %52, %53 : vector<64x256xf32>
    %cst_51 = arith.constant 0.000000e+00 : f32
    %55 = vector.broadcast %cst_51 : f32 to vector<64x256xf32>
    %56 = arith.maximumf %54, %55 : vector<64x256xf32>
    %57 = arith.truncf %56 : vector<64x256xf32> to vector<64x256xbf16>
    %58 = vector.extract_strided_slice %45 {offsets = [0, 0], sizes = [16, 256], strides = [1, 1]} : vector<64x256xbf16> to vector<16x256xbf16>
    %59 = vector.extract_strided_slice %45 {offsets = [16, 0], sizes = [16, 256], strides = [1, 1]} : vector<64x256xbf16> to vector<16x256xbf16>
    %60 = vector.extract_strided_slice %45 {offsets = [32, 0], sizes = [16, 256], strides = [1, 1]} : vector<64x256xbf16> to vector<16x256xbf16>
    %61 = vector.extract_strided_slice %45 {offsets = [48, 0], sizes = [16, 256], strides = [1, 1]} : vector<64x256xbf16> to vector<16x256xbf16>
    %62 = vector.extract_strided_slice %57 {offsets = [0, 0], sizes = [16, 256], strides = [1, 1]} : vector<64x256xbf16> to vector<16x256xbf16>
    %63 = vector.extract_strided_slice %57 {offsets = [16, 0], sizes = [16, 256], strides = [1, 1]} : vector<64x256xbf16> to vector<16x256xbf16>
    %64 = vector.extract_strided_slice %57 {offsets = [32, 0], sizes = [16, 256], strides = [1, 1]} : vector<64x256xbf16> to vector<16x256xbf16>
    %65 = vector.extract_strided_slice %57 {offsets = [48, 0], sizes = [16, 256], strides = [1, 1]} : vector<64x256xbf16> to vector<16x256xbf16>
    %66 = tpu.concatenate %58, %59, %60, %61, %62, %63, %64, %65 in 1 : vector<16x256xbf16>, vector<16x256xbf16>, vector<16x256xbf16>, vector<16x256xbf16>, vector<16x256xbf16>, vector<16x256xbf16>, vector<16x256xbf16>, vector<16x256xbf16> -> vector<16x2048xbf16>
    %c0_52 = arith.constant 0 : index
    %c0_53 = arith.constant 0 : index
    %67 = vector.load %arg5[%c0_52, %c0_53] : memref<2048x256xbf16, #tpu.memory_space<vmem>>, vector<2048x256xbf16>
    %cst_54 = arith.constant dense<0.000000e+00> : vector<16x256xf32>
    %68 = tpu.matmul %66, %67, %cst_54 {dimension_numbers = #tpu.dot_dimension_numbers<[1], [0], [0], [1], [0, 0, 1, 1], [], []>} : vector<16x2048xbf16>, vector<2048x256xbf16>, vector<16x256xf32> -> vector<16x256xf32>
    %69 = vector.broadcast %3 : vector<1x256xf32> to vector<16x256xf32>
    %70 = arith.addf %68, %69 : vector<16x256xf32>
    %cst_55 = arith.constant 0.000000e+00 : f32
    %71 = vector.broadcast %cst_55 : f32 to vector<16x256xf32>
    %72 = arith.subf %71, %70 : vector<16x256xf32>
    %73 = math.exp %72 : vector<16x256xf32>
    %cst_56 = arith.constant 1.000000e+00 : f32
    %74 = vector.broadcast %cst_56 : f32 to vector<16x256xf32>
    %75 = arith.addf %74, %73 : vector<16x256xf32>
    %76 = tpu.reciprocal %75 {approx = true} : vector<16x256xf32> -> vector<16x256xf32>
    %77 = arith.truncf %76 : vector<16x256xf32> to vector<16x256xbf16>
    %c0_57 = arith.constant 0 : index
    %c0_58 = arith.constant 0 : index
    %78 = vector.load %arg7[%c0_57, %c0_58] : memref<16x256xbf16, #tpu.memory_space<vmem>>, vector<16x256xbf16>
    tpu.vector_store %arg7[%c0_57, %c0_58], %77 {strides = array<i32>} : memref<16x256xbf16, #tpu.memory_space<vmem>>, vector<16x256xbf16>,
    return
  }
  func.func @transform_0(%arg0: i32) -> (i32, i32) {
    %c0_i32 = arith.constant 0 : i32
    %c0_i32_0 = arith.constant 0 : i32
    return %arg0, %c0_i32 : i32, i32
  }
  func.func @transform_1(%arg0: i32) -> (i32, i32) {
    %c0_i32 = arith.constant 0 : i32
    %c0_i32_0 = arith.constant 0 : i32
    %c0_i32_1 = arith.constant 0 : i32
    return %c0_i32, %c0_i32_0 : i32, i32
  }
  func.func @transform_2(%arg0: i32) -> (i32, i32, i32) {
    %c0_i32 = arith.constant 0 : i32
    %c0_i32_0 = arith.constant 0 : i32
    %c0_i32_1 = arith.constant 0 : i32
    %c0_i32_2 = arith.constant 0 : i32
    return %c0_i32, %c0_i32_0, %c0_i32_1 : i32, i32, i32
  }
  func.func @transform_3(%arg0: i32) -> (i32, i32, i32) {
    %c0_i32 = arith.constant 0 : i32
    %c0_i32_0 = arith.constant 0 : i32
    %c0_i32_1 = arith.constant 0 : i32
    %c0_i32_2 = arith.constant 0 : i32
    return %c0_i32, %c0_i32_0, %c0_i32_1 : i32, i32, i32
  }
  func.func @transform_4(%arg0: i32) -> (i32, i32) {
    %c0_i32 = arith.constant 0 : i32
    %c0_i32_0 = arith.constant 0 : i32
    %c0_i32_1 = arith.constant 0 : i32
    return %c0_i32, %c0_i32_0 : i32, i32
  }
  func.func @transform_5(%arg0: i32) -> (i32, i32) {
    %c0_i32 = arith.constant 0 : i32
    %c0_i32_0 = arith.constant 0 : i32
    %c0_i32_1 = arith.constant 0 : i32
    return %c0_i32, %c0_i32_0 : i32, i32
  }
  func.func @transform_6(%arg0: i32) -> (i32, i32) {
    %c0_i32 = arith.constant 0 : i32
    %c0_i32_0 = arith.constant 0 : i32
    return %arg0, %c0_i32 : i32, i32
  }
}

</mosaic_0001>

<bundles_post_ra>
// kernel: mae_forward.1
= control target key start
LH: loop header
LB: loop body
LE: loop exit
PB: predicated region body
PF: predicated region fallthrough
CT: control target
= control target key end

     0   :  { %11 = vsyncpa [#allocation5], 0  ;;  %s6099_s0 = inlined_call_operand.vmem [shape: bf16[128,48], index: 0, kind: input, shape index: {}]   ;;  %s6100_s1 = inlined_call_operand.vmem [shape: bf16[48,256], index: 1, kind: input, shape index: {}]   ;;  %s6101_s2 = inlined_call_operand.vmem [shape: bf16[3,256,256], index: 2, kind: input, shape index: {}]   ;;  %s6102_s3 = inlined_call_operand.hbm [shape: bf16[3,256,256], index: 3, kind: input, shape index: {}]   ;;  %s6103_s4 = inlined_call_operand.hbm [shape: bf16[2048,256], index: 4, kind: input, shape index: {}]   ;;  %s6104_s5 = inlined_call_operand.vmem [shape: f32[4,256], index: 5, kind: input, shape index: {}]   ;;  %s6105_s6 = inlined_call_operand.vmem [shape: bf16[16,256], index: 6, kind: output, shape index: {}]  }
   0x1   :  { %12 = vsyncpa [#allocation7], 0  ;;  %s5456_s21 = smov [#allocation4]   ;;  %s5408_s25 = scalar_lea.hbm %s6102_s3, 12288 }
   0x2   :  { %s24_s22 = sshll.u32 %s5456_s21, 4  ;;  %p5409_p0 = scmp.ne.s32.totalorder %s6102_s3, %s5408_s25  ;;  %s25_s22 = int_to_ptr.vmem [resolvable:$true] %s24_s22 }
   0x3   :  { %p5412_p1 = scmp.lt.u32.totalorder %s5408_s25, %s6102_s3 }
   0x5   :  { %p5414_p2 = pnand %p5412_p1, %p5409_p0 }
   0x7   :  { %5417 = shalt.err (!%p5414_p2)
}
   0x8   :  { %s5418_s30 = scalar_lea.vmem %s25_s22, 12288  ;;  %p5423_p4 = scmp.lt.s32.totalorder %s25_s22, %s25_s22 }
   0x9   :  { %p5419_p3 = scmp.ne.s32.totalorder %s25_s22, %s5418_s30  ;;  %p5424_p5 = scmp.lt.s32.totalorder %s5418_s30, %s5418_s30 }
   0xb   :  { %p5425_p6 = por %p5424_p5, %p5423_p4 }
   0xd   :  { %p5426_p7 = pnand %p5425_p6, %p5419_p3 }
   0xf   :  { %5429 = shalt.err (!%p5426_p7)
}
  0x10   :  { %s5457_s7 = smov 128   ;;  %s5458_s8 = smov 8  }
  0x11   :  { %30 = dma.hbm_to_vmem [thread:$0]  %s6102_s3, 12288, %s25_s22, [#allocation5], %s5457_s7, %s5457_s7, %s5458_s8  }
  0x12   :  { %s5459_s11 = smov [#allocation6]   ;;  %s5430_s15 = scalar_lea.hbm %s6103_s4, 32768 }
  0x13   :  { %s36_s12 = sshll.u32 %s5459_s11, 4  ;;  %p5431_p8 = scmp.ne.s32.totalorder %s6103_s4, %s5430_s15  ;;  %s37_s12 = int_to_ptr.vmem [resolvable:$true] %s36_s12 }
  0x14   :  { %p5434_p9 = scmp.lt.u32.totalorder %s5430_s15, %s6103_s4 }
  0x16   :  { %p5436_p10 = pnand %p5434_p9, %p5431_p8 }
  0x18   :  { %5439 = shalt.err (!%p5436_p10)
}
  0x19   :  { %s5440_s20 = scalar_lea.vmem %s37_s12, 32768  ;;  %p5445_p12 = scmp.lt.s32.totalorder %s37_s12, %s37_s12 }
  0x1a   :  { %p5441_p11 = scmp.ne.s32.totalorder %s37_s12, %s5440_s20  ;;  %p5446_p13 = scmp.lt.s32.totalorder %s5440_s20, %s5440_s20 }
  0x1c   :  { %p5447_p0 = por %p5446_p13, %p5445_p12 }
  0x1e   :  { %p5448_p1 = pnand %p5447_p0, %p5441_p11 }
  0x20   :  { %5451 = shalt.err (!%p5448_p1)
}
  0x21   :  { %42 = dma.hbm_to_vmem [thread:$0]  %s6103_s4, 32768, %s37_s12, [#allocation7], %s5457_s7, %s5457_s7, %s5458_s8  }
  0x22   :  { %5452 = dma.done.wait [#allocation5], 12288  }
  0x23   :  { %5453 = vsyncadd [#allocation5], 4294955008 }
  0x24   :  { %5454 = dma.done.wait [#allocation7], 32768  }
  0x25   :  { %5455 = vsyncadd [#allocation7], 4294934528  ;;  %v5460_v0 = vmov 0   ;;  %v4703_v1 = vld [vmem:[%s6100_s1 + $0x4] ss:$8 sps:$4 sm:$0xff]   ;;  %vm166_vm0 = vcmask 392192   ;;  %v86_v48 = vlaneseq }
  0x26   :  { %223 = vmatprep.mubr.bf16.mxu0 %v5460_v0  ;;  %v4705_v2 = vld [vmem:[%s6100_s1] ss:$8 sps:$4 sm:$0xff]   ;;  %191 = vmatprep.subr.bf16.mxu0 %v4703_v1  ;;  %v4706_v3 = vld [vmem:[%s6100_s1 + $0x14] ss:$8 sps:$4 sm:$0xff]   ;;  %v4708_v4 = vld [vmem:[%s6100_s1 + $0x10] ss:$8 sps:$4 sm:$0xff]  }
  0x27   :  { %192 = vmatpush1.bf16.msra.mxu0 %v4705_v2  ;;  %v4709_v5 = vld [vmem:[%s6100_s1 + $0x24] ss:$8 sps:$4 sm:$0xff]   ;;  %v4711_v6 = vld [vmem:[%s6100_s1 + $0x20] ss:$8 sps:$4 sm:$0xff]   ;;  %v4725_v10 = vld [vmem:[%s6101_s2 + $0x114] ss:$8 sps:$4 sm:$0xff]  }
  0x28   :  { %193 = vmatprep.subr.bf16.mxu0 %v4706_v3  ;;  %v4712_v7 = vld [vmem:[%s6099_s0] sm:$0xff]   ;;  %v4723_v11 = vld [vmem:[%s6101_s2 + $0x110] ss:$8 sps:$4 sm:$0xff]   ;;  %v4713_v13 = vld [vmem:[%s6099_s0 + $0x8] sm:$0xff]   ;;  %v87_v49 = vshrl.u32 %v86_v48, 7 }
  0x29   :  { %v4720_v8 = vld [vmem:[%s6101_s2 + $0x100] ss:$8 sps:$4 sm:$0xff]   ;;  %v4722_v9 = vld [vmem:[%s6101_s2 + $0x104] ss:$8 sps:$4 sm:$0xff]   ;;  %v4731_v15 = vld [vmem:[%s6101_s2 + $0x134] ss:$8 sps:$4 sm:$0xff]  }
  0x2a   :  { %v4728_v12 = vld [vmem:[%s6101_s2 + $0x124] ss:$8 sps:$4 sm:$0xff]   ;;  %v4726_v14 = vld [vmem:[%s6101_s2 + $0x120] ss:$8 sps:$4 sm:$0xff]   ;;  %v4729_v16 = vld [vmem:[%s6101_s2 + $0x130] ss:$8 sps:$4 sm:$0xff]  }
  0x2b   :  { %194 = vmatpush1.bf16.msra.mxu0 %v4708_v4  ;;  %v4734_v17 = vld [vmem:[%s6101_s2 + $0x144] ss:$8 sps:$4 sm:$0xff]   ;;  %v4714_v18 = vld [vmem:[%s6099_s0 + $0x10] sm:$0xff]   ;;  %v4732_v19 = vld [vmem:[%s6101_s2 + $0x140] ss:$8 sps:$4 sm:$0xff]   ;;  %v5677_v50 = vsub.s32 0, %v87_v49 }
  0x2c   :  { %195 = vmatprep.subr.bf16.mxu0 %v4709_v5  ;;  %v4737_v20 = vld [vmem:[%s6101_s2 + $0x154] ss:$8 sps:$4 sm:$0xff]   ;;  %v4735_v21 = vld [vmem:[%s6101_s2 + $0x150] ss:$8 sps:$4 sm:$0xff]   ;;  %v4716_v23 = vld [vmem:[%s6099_s0 + $0x20] sm:$0xff]   ;;  %v5682_v52 = vsub.s32 1, %v87_v49 }
  0x2d   :  { %v4715_v22 = vld [vmem:[%s6099_s0 + $0x18] sm:$0xff]   ;;  %v4717_v24 = vld [vmem:[%s6099_s0 + $0x28] sm:$0xff]   ;;  %v4718_v25 = vld [vmem:[%s6099_s0 + $0x30] sm:$0xff]  }
  0x2e   :  { %v4719_v26 = vld [vmem:[%s6099_s0 + $0x38] sm:$0xff]   ;;  %v4740_v27 = vld [vmem:[%s6101_s2 + $0x164] ss:$8 sps:$4 sm:$0xff]   ;;  %v4738_v28 = vld [vmem:[%s6101_s2 + $0x160] ss:$8 sps:$4 sm:$0xff]  }
  0x2f   :  { %196 = vmatpush1.bf16.msra.mxu0 %v4711_v6  ;;  %v4743_v29 = vld [vmem:[%s6101_s2 + $0x174] ss:$8 sps:$4 sm:$0xff]   ;;  %v4741_v30 = vld [vmem:[%s6101_s2 + $0x170] ss:$8 sps:$4 sm:$0xff]   ;;  %v4746_v31 = vld [vmem:[%s6101_s2 + $0x184] ss:$8 sps:$4 sm:$0xff]  }
  0x30   :  { %611 = vmatprep.subr.bf16.mxu0 %v4722_v9  ;;  %v4744_v32 = vld [vmem:[%s6101_s2 + $0x180] ss:$8 sps:$4 sm:$0xff]   ;;  %v4749_v33 = vld [vmem:[%s6101_s2 + $0x194] ss:$8 sps:$4 sm:$0xff]   ;;  %v4747_v34 = vld [vmem:[%s6101_s2 + $0x190] ss:$8 sps:$4 sm:$0xff]  }
  0x31   :  { %v4752_v35 = vld [vmem:[%s6101_s2 + $0x1a4] ss:$8 sps:$4 sm:$0xff]   ;;  %v4750_v36 = vld [vmem:[%s6101_s2 + $0x1a0] ss:$8 sps:$4 sm:$0xff]   ;;  %v4755_v37 = vld [vmem:[%s6101_s2 + $0x1b4] ss:$8 sps:$4 sm:$0xff]  }
  0x32   :  { %4094 = vmatmul.mubr.msk.bf16.vlgmr.msra.gmra.mrb[0].mxu0 %vm166_vm0, %v4712_v7  ;;  %v4753_v38 = vld [vmem:[%s6101_s2 + $0x1b0] ss:$8 sps:$4 sm:$0xff]   ;;  %v4758_v39 = vld [vmem:[%s6101_s2 + $0x1c4] ss:$8 sps:$4 sm:$0xff]   ;;  %v4756_v40 = vld [vmem:[%s6101_s2 + $0x1c0] ss:$8 sps:$4 sm:$0xff]  }
  0x33   :  { %233 = vmatprep.mubr.bf16.mxu0 %v5460_v0  ;;  %612 = vmatpush1.bf16.msra.mxu0 %v4720_v8  ;;  %v4761_v41 = vld [vmem:[%s6101_s2 + $0x1d4] ss:$8 sps:$4 sm:$0xff]   ;;  %v4759_v42 = vld [vmem:[%s6101_s2 + $0x1d0] ss:$8 sps:$4 sm:$0xff]   ;;  %v4764_v43 = vld [vmem:[%s6101_s2 + $0x1e4] ss:$8 sps:$4 sm:$0xff]  }
  0x34   :  { %613 = vmatprep.subr.bf16.mxu0 %v4725_v10  ;;  %v4762_v44 = vld [vmem:[%s6101_s2 + $0x1e0] ss:$8 sps:$4 sm:$0xff]   ;;  %v4767_v45 = vld [vmem:[%s6101_s2 + $0x1f4] ss:$8 sps:$4 sm:$0xff]   ;;  %v4765_v46 = vld [vmem:[%s6101_s2 + $0x1f0] ss:$8 sps:$4 sm:$0xff]  }
  0x35   :  { %v4770_v47 = vld [vmem:[%s6101_s2 + $0x4] ss:$8 sps:$4 sm:$0xff]  }
  0x36   :  { %v52_v51 = vld [vmem:[%s6104_s5] ss:$4 sm:$0x3] }
  0x37   :  { %614 = vmatpush1.bf16.msra.mxu0 %v4723_v11  ;;  %v5685_v53 = vrot.slane %v52_v51, %v5677_v50  ;;  %v5688_v54 = vrot.slane %v52_v51, %v5682_v52 }
  0x38   :  { %615 = vmatprep.subr.bf16.mxu0 %v4728_v12 }
  0x3a   :  { %4095 = vmatmul.mubr.msk.bf16.gmra.mrb[4].mxu0 %vm166_vm0, %v4713_v13 }
  0x3b   :  { %243 = vmatprep.mubr.bf16.mxu0 %v5460_v0  ;;  %616 = vmatpush1.bf16.msra.mxu0 %v4726_v14 }
  0x3c   :  { %617 = vmatprep.subr.bf16.mxu0 %v4731_v15 }
  0x3f   :  { %618 = vmatpush1.bf16.msra.mxu0 %v4729_v16 }
  0x40   :  { %619 = vmatprep.subr.bf16.mxu0 %v4734_v17 }
  0x42   :  { %4096 = vmatmul.mubr.msk.bf16.gmra.mrb[8].mxu0 %vm166_vm0, %v4714_v18 }
  0x43   :  { %253 = vmatprep.mubr.bf16.mxu0 %v5460_v0  ;;  %620 = vmatpush1.bf16.msra.mxu0 %v4732_v19 }
  0x44   :  { %621 = vmatprep.subr.bf16.mxu0 %v4737_v20 }
  0x47   :  { %622 = vmatpush1.bf16.msra.mxu0 %v4735_v21 }
  0x48   :  { %623 = vmatprep.subr.bf16.mxu0 %v4740_v27 }
  0x4a   :  { %4097 = vmatmul.mubr.msk.bf16.gmra.mrb[12].mxu0 %vm166_vm0, %v4715_v22 }
  0x4b   :  { %263 = vmatprep.mubr.bf16.mxu0 %v5460_v0  ;;  %624 = vmatpush1.bf16.msra.mxu0 %v4738_v28 }
  0x4c   :  { %625 = vmatprep.subr.bf16.mxu0 %v4743_v29 }
  0x4f   :  { %626 = vmatpush1.bf16.msra.mxu0 %v4741_v30 }
  0x50   :  { %627 = vmatprep.subr.bf16.mxu0 %v4746_v31 }
  0x52   :  { %4098 = vmatmul.mubr.msk.bf16.gmra.mrb[16].mxu0 %vm166_vm0, %v4716_v23 }
  0x53   :  { %273 = vmatprep.mubr.bf16.mxu0 %v5460_v0  ;;  %628 = vmatpush1.bf16.msra.mxu0 %v4744_v32 }
  0x54   :  { %629 = vmatprep.subr.bf16.mxu0 %v4749_v33 }
  0x57   :  { %630 = vmatpush1.bf16.msra.mxu0 %v4747_v34 }
  0x58   :  { %631 = vmatprep.subr.bf16.mxu0 %v4752_v35 }
  0x5a   :  { %4099 = vmatmul.mubr.msk.bf16.gmra.mrb[20].mxu0 %vm166_vm0, %v4717_v24 }
  0x5b   :  { %283 = vmatprep.mubr.bf16.mxu0 %v5460_v0  ;;  %632 = vmatpush1.bf16.msra.mxu0 %v4750_v36 }
  0x5c   :  { %633 = vmatprep.subr.bf16.mxu0 %v4755_v37 }
  0x5f   :  { %634 = vmatpush1.bf16.msra.mxu0 %v4753_v38 }
  0x60   :  { %635 = vmatprep.subr.bf16.mxu0 %v4758_v39 }
  0x62   :  { %4100 = vmatmul.mubr.msk.bf16.gmra.mrb[24].mxu0 %vm166_vm0, %v4718_v25 }
  0x63   :  { %293 = vmatprep.mubr.bf16.mxu0 %v5460_v0  ;;  %636 = vmatpush1.bf16.msra.mxu0 %v4756_v40 }
  0x64   :  { %637 = vmatprep.subr.bf16.mxu0 %v4761_v41 }
  0x67   :  { %638 = vmatpush1.bf16.msra.mxu0 %v4759_v42 }
  0x68   :  { %639 = vmatprep.subr.bf16.mxu0 %v4764_v43 }
  0x6a   :  { %4101 = vmatmul.mubr.msk.bf16.gmra.mrb[28].mxu0 %vm166_vm0, %v4719_v26 }
  0x6b   :  { %640 = vmatpush1.bf16.msra.mxu0 %v4762_v44 }
  0x6c   :  { %641 = vmatprep.subr.bf16.mxu0 %v4767_v45 }
  0x6f   :  { %642 = vmatpush1.bf16.msra.mxu0 %v4765_v46 }
  0x70   :  { %844 = vmatprep.subr.bf16.mxu0 %v4770_v47 }
 0x105   :  { %v225_v55 = vpop.f32.mrb[0].mxu0 }
 0x106   :  { %v226_v56 = vadd.f32 %v225_v55, %v5685_v53  ;;  %v227_v57 = vpop.f32.mrb[1].mxu0 }
 0x107   :  { %v228_v58 = vadd.f32 %v227_v57, %v5688_v54  ;;  %v229_v59 = vpop.f32.mrb[2].mxu0 }
 0x108   :  { %v230_v60 = vadd.f32 %v229_v59, %v5685_v53  ;;  %v231_v61 = vpop.f32.mrb[3].mxu0  ;;  %v304_v63 = vmax.f32 %v226_v56, 0.0 }
 0x109   :  { %v232_v62 = vadd.f32 %v231_v61, %v5688_v54  ;;  %v305_v2 = vmax.f32 %v228_v58, 0.0 }
 0x10a   :  { %v306_v1 = vmax.f32 %v230_v60, 0.0 }
 0x10b   :  { %v307_v3 = vmax.f32 %v232_v62, 0.0 }
 0x10c   :  { %v5694_v4 = vpack.c.bf16 %v306_v1, %v304_v63 }
 0x10d   :  { %v5696_v5 = vpack.c.bf16 %v307_v3, %v305_v2  ;;  %v235_v6 = vpop.f32.mrb[4].mxu0  ;;  %v4768_v3 = vld [vmem:[%s6101_s2] ss:$8 sps:$4 sm:$0xff]  }
 0x10e   :  { %v236_v7 = vadd.f32 %v235_v6, %v5685_v53  ;;  %v237_v8 = vpop.f32.mrb[5].mxu0 }
 0x10f   :  { %v238_v9 = vadd.f32 %v237_v8, %v5688_v54  ;;  %v239_v10 = vpop.f32.mrb[6].mxu0 }
 0x110   :  { %v240_v11 = vadd.f32 %v239_v10, %v5685_v53  ;;  %v241_v12 = vpop.f32.mrb[7].mxu0  ;;  %v308_v14 = vmax.f32 %v236_v7, 0.0  ;;  %v4773_v7 = vld [vmem:[%s6101_s2 + $0x14] ss:$8 sps:$4 sm:$0xff]  }
 0x111   :  { %v242_v13 = vadd.f32 %v241_v12, %v5688_v54  ;;  %v309_v16 = vmax.f32 %v238_v9, 0.0 }
 0x112   :  { %v310_v15 = vmax.f32 %v240_v11, 0.0 }
 0x113   :  { %v311_v17 = vmax.f32 %v242_v13, 0.0 }
 0x114   :  { %v5702_v18 = vpack.c.bf16 %v310_v15, %v308_v14  ;;  %v4771_v15 = vld [vmem:[%s6101_s2 + $0x10] ss:$8 sps:$4 sm:$0xff]  }
 0x115   :  { %v5704_v19 = vpack.c.bf16 %v311_v17, %v309_v16  ;;  %v245_v20 = vpop.f32.mrb[8].mxu0 }
 0x116   :  { %v246_v21 = vadd.f32 %v245_v20, %v5685_v53  ;;  %v247_v22 = vpop.f32.mrb[9].mxu0  ;;  %v4776_v20 = vld [vmem:[%s6101_s2 + $0x24] ss:$8 sps:$4 sm:$0xff]  }
 0x117   :  { %v248_v23 = vadd.f32 %v247_v22, %v5688_v54  ;;  %v249_v24 = vpop.f32.mrb[10].mxu0 }
 0x118   :  { %v250_v25 = vadd.f32 %v249_v24, %v5685_v53  ;;  %v251_v26 = vpop.f32.mrb[11].mxu0  ;;  %v312_v28 = vmax.f32 %v246_v21, 0.0  ;;  %v4774_v24 = vld [vmem:[%s6101_s2 + $0x20] ss:$8 sps:$4 sm:$0xff]  }
 0x119   :  { %v252_v27 = vadd.f32 %v251_v26, %v5688_v54  ;;  %v313_v30 = vmax.f32 %v248_v23, 0.0 }
 0x11a   :  { %v314_v29 = vmax.f32 %v250_v25, 0.0 }
 0x11b   :  { %v315_v31 = vmax.f32 %v252_v27, 0.0  ;;  %v4779_v27 = vld [vmem:[%s6101_s2 + $0x34] ss:$8 sps:$4 sm:$0xff]  }
 0x11c   :  { %v5710_v32 = vpack.c.bf16 %v314_v29, %v312_v28 }
 0x11d   :  { %v5712_v33 = vpack.c.bf16 %v315_v31, %v313_v30  ;;  %v255_v34 = vpop.f32.mrb[12].mxu0 }
 0x11e   :  { %v256_v35 = vadd.f32 %v255_v34, %v5685_v53  ;;  %v257_v36 = vpop.f32.mrb[13].mxu0 }
 0x11f   :  { %v258_v37 = vadd.f32 %v257_v36, %v5688_v54  ;;  %v259_v38 = vpop.f32.mrb[14].mxu0 }
 0x120   :  { %v260_v39 = vadd.f32 %v259_v38, %v5685_v53  ;;  %v261_v40 = vpop.f32.mrb[15].mxu0  ;;  %v316_v42 = vmax.f32 %v256_v35, 0.0 }
 0x121   :  { %v262_v41 = vadd.f32 %v261_v40, %v5688_v54  ;;  %v317_v44 = vmax.f32 %v258_v37, 0.0  ;;  %v4777_v37 = vld [vmem:[%s6101_s2 + $0x30] ss:$8 sps:$4 sm:$0xff]   ;;  %v4782_v40 = vld [vmem:[%s6101_s2 + $0x44] ss:$8 sps:$4 sm:$0xff]  }
 0x122   :  { %v318_v43 = vmax.f32 %v260_v39, 0.0 }
 0x123   :  { %v319_v45 = vmax.f32 %v262_v41, 0.0 }
 0x124   :  { %v5718_v46 = vpack.c.bf16 %v318_v43, %v316_v42 }
 0x125   :  { %v5720_v47 = vpack.c.bf16 %v319_v45, %v317_v44  ;;  %v265_v48 = vpop.f32.mrb[16].mxu0  ;;  %v4780_v44 = vld [vmem:[%s6101_s2 + $0x40] ss:$8 sps:$4 sm:$0xff]  }
 0x126   :  { %v266_v49 = vadd.f32 %v265_v48, %v5685_v53  ;;  %v267_v51 = vpop.f32.mrb[17].mxu0 }
 0x127   :  { %v268_v55 = vadd.f32 %v267_v51, %v5688_v54  ;;  %v269_v56 = vpop.f32.mrb[18].mxu0 }
 0x128   :  { %v270_v57 = vadd.f32 %v269_v56, %v5685_v53  ;;  %v271_v58 = vpop.f32.mrb[19].mxu0  ;;  %v320_v60 = vmax.f32 %v266_v49, 0.0  ;;  %v4785_v49 = vld [vmem:[%s6101_s2 + $0x54] ss:$8 sps:$4 sm:$0xff]  }
 0x129   :  { %v272_v59 = vadd.f32 %v271_v58, %v5688_v54  ;;  %v321_v62 = vmax.f32 %v268_v55, 0.0 }
 0x12a   :  { %v322_v61 = vmax.f32 %v270_v57, 0.0 }
 0x12b   :  { %v323_v63 = vmax.f32 %v272_v59, 0.0 }
 0x12c   :  { %v344_v1 = vpack.c.bf16 %v322_v61, %v320_v60  ;;  %v4783_v61 = vld [vmem:[%s6101_s2 + $0x50] ss:$8 sps:$4 sm:$0xff]  }
 0x12d   :  { %v345_v2 = vpack.c.bf16 %v323_v63, %v321_v62  ;;  %v275_v6 = vpop.f32.mrb[20].mxu0 }
 0x12e   :  { %v276_v8 = vadd.f32 %v275_v6, %v5685_v53  ;;  %v277_v9 = vpop.f32.mrb[21].mxu0 }
 0x12f   :  { %643 = vmatprep.mubr.bf16.mxu0 %v345_v2  ;;  %v278_v10 = vadd.f32 %v277_v9, %v5688_v54  ;;  %v279_v11 = vpop.f32.mrb[22].mxu0  ;;  %v4794_v9 = vld [vmem:[%s6101_s2 + $0x84] ss:$8 sps:$4 sm:$0xff]  }
 0x130   :  { %644 = vmatmul.mubr.bf16.vlgmr.msra.gmra.mrb[32].mxu0 %v344_v1  ;;  %v324_v12 = vmax.f32 %v276_v8, 0.0  ;;  %v280_v13 = vadd.f32 %v279_v11, %v5685_v53  ;;  %v281_v14 = vpop.f32.mrb[23].mxu0  ;;  %v4788_v1 = vld [vmem:[%s6101_s2 + $0x64] ss:$8 sps:$4 sm:$0xff]   ;;  %v4791_v8 = vld [vmem:[%s6101_s2 + $0x74] ss:$8 sps:$4 sm:$0xff]  }
 0x131   :  { %845 = vmatpush1.bf16.msra.mxu0 %v4768_v3  ;;  %v325_v16 = vmax.f32 %v278_v10, 0.0  ;;  %v282_v17 = vadd.f32 %v281_v14, %v5688_v54  ;;  %v4792_v10 = vld [vmem:[%s6101_s2 + $0x80] ss:$8 sps:$4 sm:$0xff]   ;;  %v4797_v11 = vld [vmem:[%s6101_s2 + $0x94] ss:$8 sps:$4 sm:$0xff]  }
 0x132   :  { %846 = vmatprep.subr.bf16.mxu0 %v4773_v7  ;;  %v326_v21 = vmax.f32 %v280_v13, 0.0  ;;  %v4800_v13 = vld [vmem:[%s6101_s2 + $0xa4] ss:$8 sps:$4 sm:$0xff]   ;;  %v4798_v14 = vld [vmem:[%s6101_s2 + $0xa0] ss:$8 sps:$4 sm:$0xff]  }
 0x133   :  { %v327_v22 = vmax.f32 %v282_v17, 0.0  ;;  %v4806_v17 = vld [vmem:[%s6101_s2 + $0xc4] ss:$8 sps:$4 sm:$0xff]  }
 0x134   :  { %v346_v23 = vpack.c.bf16 %v326_v21, %v324_v12  ;;  %v4795_v12 = vld [vmem:[%s6101_s2 + $0x90] ss:$8 sps:$4 sm:$0xff]   ;;  %v4809_v21 = vld [vmem:[%s6101_s2 + $0xd4] ss:$8 sps:$4 sm:$0xff]  }
 0x135   :  { %847 = vmatpush1.bf16.msra.mxu0 %v4771_v15  ;;  %v347_v25 = vpack.c.bf16 %v327_v22, %v325_v16  ;;  %v285_v26 = vpop.f32.mrb[24].mxu0  ;;  %v4803_v15 = vld [vmem:[%s6101_s2 + $0xb4] ss:$8 sps:$4 sm:$0xff]   ;;  %v4801_v16 = vld [vmem:[%s6101_s2 + $0xb0] ss:$8 sps:$4 sm:$0xff]  }
 0x136   :  { %848 = vmatprep.subr.bf16.mxu0 %v4776_v20  ;;  %v286_v28 = vadd.f32 %v285_v26, %v5685_v53  ;;  %v287_v29 = vpop.f32.mrb[25].mxu0  ;;  %v4804_v20 = vld [vmem:[%s6101_s2 + $0xc0] ss:$8 sps:$4 sm:$0xff]   ;;  %v4807_v22 = vld [vmem:[%s6101_s2 + $0xd0] ss:$8 sps:$4 sm:$0xff]  }
 0x137   :  { %v288_v30 = vadd.f32 %v287_v29, %v5688_v54  ;;  %v289_v31 = vpop.f32.mrb[26].mxu0  ;;  %653 = vmatprep.mubr.bf16.mxu0 %v347_v25  ;;  %v4815_v25 = vld [vmem:[%s6101_s2 + $0xf4] ss:$8 sps:$4 sm:$0xff]   ;;  %v4813_v26 = vld [vmem:[%s6101_s2 + $0xf0] ss:$8 sps:$4 sm:$0xff]  }
 0x138   :  { %v328_v34 = vmax.f32 %v286_v28, 0.0  ;;  %v290_v35 = vadd.f32 %v289_v31, %v5685_v53  ;;  %v291_v36 = vpop.f32.mrb[27].mxu0  ;;  %654 = vmatmul.mubr.bf16.gmra.mrb[36].mxu0 %v346_v23  ;;  %v4812_v23 = vld [vmem:[%s6101_s2 + $0xe4] ss:$8 sps:$4 sm:$0xff]   ;;  %v4816_v28 = vld [vmem:[%s6101_s2 + $0x200] ss:$8 sps:$4 sm:$0xff]  }
 0x139   :  { %849 = vmatpush1.bf16.msra.mxu0 %v4774_v24  ;;  %v329_v38 = vmax.f32 %v288_v30, 0.0  ;;  %v292_v39 = vadd.f32 %v291_v36, %v5688_v54  ;;  %v4810_v24 = vld [vmem:[%s6101_s2 + $0xe0] ss:$8 sps:$4 sm:$0xff]   ;;  %v4821_v29 = vld [vmem:[%s6101_s2 + $0x214] ss:$8 sps:$4 sm:$0xff]  }
 0x13a   :  { %850 = vmatprep.subr.bf16.mxu0 %v4779_v27  ;;  %v330_v41 = vmax.f32 %v290_v35, 0.0  ;;  %v4818_v27 = vld [vmem:[%s6101_s2 + $0x204] ss:$8 sps:$4 sm:$0xff]   ;;  %v4819_v30 = vld [vmem:[%s6101_s2 + $0x210] ss:$8 sps:$4 sm:$0xff]  }
 0x13b   :  { %v331_v42 = vmax.f32 %v292_v39, 0.0  ;;  %v4824_v31 = vld [vmem:[%s6101_s2 + $0x224] ss:$8 sps:$4 sm:$0xff]   ;;  %v4827_v35 = vld [vmem:[%s6101_s2 + $0x234] ss:$8 sps:$4 sm:$0xff]  }
 0x13c   :  { %v348_v43 = vpack.c.bf16 %v330_v41, %v328_v34  ;;  %v4822_v34 = vld [vmem:[%s6101_s2 + $0x220] ss:$8 sps:$4 sm:$0xff]   ;;  %v4825_v36 = vld [vmem:[%s6101_s2 + $0x230] ss:$8 sps:$4 sm:$0xff]   ;;  %v4833_v39 = vld [vmem:[%s6101_s2 + $0x254] ss:$8 sps:$4 sm:$0xff]  }
 0x13d   :  { %851 = vmatpush1.bf16.msra.mxu0 %v4777_v37  ;;  %v349_v45 = vpack.c.bf16 %v331_v42, %v329_v38  ;;  %v295_v48 = vpop.f32.mrb[28].mxu0  ;;  %v4830_v37 = vld [vmem:[%s6101_s2 + $0x244] ss:$8 sps:$4 sm:$0xff]   ;;  %v4828_v38 = vld [vmem:[%s6101_s2 + $0x240] ss:$8 sps:$4 sm:$0xff]  }
 0x13e   :  { %852 = vmatprep.subr.bf16.mxu0 %v4782_v40  ;;  %v296_v51 = vadd.f32 %v295_v48, %v5685_v53  ;;  %v297_v55 = vpop.f32.mrb[29].mxu0  ;;  %v4831_v40 = vld [vmem:[%s6101_s2 + $0x250] ss:$8 sps:$4 sm:$0xff]   ;;  %v4836_v41 = vld [vmem:[%s6101_s2 + $0x264] ss:$8 sps:$4 sm:$0xff]  }
 0x13f   :  { %v298_v56 = vadd.f32 %v297_v55, %v5688_v54  ;;  %v299_v57 = vpop.f32.mrb[30].mxu0  ;;  %663 = vmatprep.mubr.bf16.mxu0 %v349_v45  ;;  %v4834_v42 = vld [vmem:[%s6101_s2 + $0x260] ss:$8 sps:$4 sm:$0xff]   ;;  %v4842_v45 = vld [vmem:[%s6101_s2 + $0x284] ss:$8 sps:$4 sm:$0xff]  }
 0x140   :  { %v332_v58 = vmax.f32 %v296_v51, 0.0  ;;  %v300_v59 = vadd.f32 %v299_v57, %v5685_v53  ;;  %v301_v60 = vpop.f32.mrb[31].mxu0  ;;  %664 = vmatmul.mubr.bf16.gmra.mrb[40].mxu0 %v348_v43  ;;  %v4786_v53 = vld [vmem:[%s6101_s2 + $0x60] ss:$8 sps:$4 sm:$0xff]   ;;  %v4839_v43 = vld [vmem:[%s6101_s2 + $0x274] ss:$8 sps:$4 sm:$0xff]  }
 0x141   :  { %853 = vmatpush1.bf16.msra.mxu0 %v4780_v44  ;;  %v333_v62 = vmax.f32 %v298_v56, 0.0  ;;  %v302_v63 = vadd.f32 %v301_v60, %v5688_v54  ;;  %v4789_v54 = vld [vmem:[%s6101_s2 + $0x70] ss:$8 sps:$4 sm:$0xff]   ;;  %v4840_v48 = vld [vmem:[%s6101_s2 + $0x280] ss:$8 sps:$4 sm:$0xff]  }
 0x142   :  { %854 = vmatprep.subr.bf16.mxu0 %v4785_v49  ;;  %v334_v2 = vmax.f32 %v300_v59, 0.0  ;;  %v4837_v44 = vld [vmem:[%s6101_s2 + $0x270] ss:$8 sps:$4 sm:$0xff]   ;;  %v4845_v49 = vld [vmem:[%s6101_s2 + $0x294] ss:$8 sps:$4 sm:$0xff]  }
 0x143   :  { %v335_v3 = vmax.f32 %v302_v63, 0.0  ;;  %v4848_v51 = vld [vmem:[%s6101_s2 + $0x2a4] ss:$8 sps:$4 sm:$0xff]   ;;  %v4846_v55 = vld [vmem:[%s6101_s2 + $0x2a0] ss:$8 sps:$4 sm:$0xff]  }
 0x144   :  { %v350_v6 = vpack.c.bf16 %v334_v2, %v332_v58  ;;  %v4851_v56 = vld [vmem:[%s6101_s2 + $0x2b4] ss:$8 sps:$4 sm:$0xff]   ;;  %v4849_v57 = vld [vmem:[%s6101_s2 + $0x2b0] ss:$8 sps:$4 sm:$0xff]   ;;  %v4854_v58 = vld [vmem:[%s6101_s2 + $0x2c4] ss:$8 sps:$4 sm:$0xff]  }
 0x145   :  { %855 = vmatpush1.bf16.msra.mxu0 %v4783_v61  ;;  %v351_v7 = vpack.c.bf16 %v335_v3, %v333_v62  ;;  %v4852_v59 = vld [vmem:[%s6101_s2 + $0x2c0] ss:$8 sps:$4 sm:$0xff]   ;;  %v4857_v60 = vld [vmem:[%s6101_s2 + $0x2d4] ss:$8 sps:$4 sm:$0xff]   ;;  %v4855_v61 = vld [vmem:[%s6101_s2 + $0x2d0] ss:$8 sps:$4 sm:$0xff]  }
 0x146   :  { %856 = vmatprep.subr.bf16.mxu0 %v4788_v1  ;;  %v4860_v62 = vld [vmem:[%s6101_s2 + $0x2e4] ss:$8 sps:$4 sm:$0xff]   ;;  %v4858_v63 = vld [vmem:[%s6101_s2 + $0x2e0] ss:$8 sps:$4 sm:$0xff]   ;;  %v4863_v1 = vld [vmem:[%s6101_s2 + $0x2f4] ss:$8 sps:$4 sm:$0xff]  }
 0x147   :  { %673 = vmatprep.mubr.bf16.mxu0 %v351_v7  ;;  %v4861_v2 = vld [vmem:[%s6101_s2 + $0x2f0] ss:$8 sps:$4 sm:$0xff]   ;;  %v4866_v3 = vld [vmem:[#allocation4 + $0x104] ss:$8 sps:$4 sm:$0xff]  }
 0x148   :  { %674 = vmatmul.mubr.bf16.gmra.mrb[44].mxu0 %v350_v6  ;;  %v4864_v6 = vld [vmem:[#allocation4 + $0x100] ss:$8 sps:$4 sm:$0xff]   ;;  %v4867_v7 = vld [vmem:[#allocation4 + $0x110] ss:$8 sps:$4 sm:$0xff]  }
 0x149   :  { %857 = vmatpush1.bf16.msra.mxu0 %v4786_v53  ;;  %876 = vmatprep.mubr.bf16.mxu0 %v5460_v0  ;;  %v4869_v53 = vld [vmem:[#allocation4 + $0x114] ss:$8 sps:$4 sm:$0xff]  }
 0x14a   :  { %858 = vmatprep.subr.bf16.mxu0 %v4791_v8  ;;  %v4872_v8 = vld [vmem:[#allocation4 + $0x124] ss:$8 sps:$4 sm:$0xff]  }
 0x14d   :  { %859 = vmatpush1.bf16.msra.mxu0 %v4789_v54  ;;  %v4870_v54 = vld [vmem:[#allocation4 + $0x120] ss:$8 sps:$4 sm:$0xff]  }
 0x14e   :  { %860 = vmatprep.subr.bf16.mxu0 %v4794_v9  ;;  %v4875_v9 = vld [vmem:[#allocation4 + $0x134] ss:$8 sps:$4 sm:$0xff]  }
 0x151   :  { %861 = vmatpush1.bf16.msra.mxu0 %v4792_v10  ;;  %v4873_v10 = vld [vmem:[#allocation4 + $0x130] ss:$8 sps:$4 sm:$0xff]  }
 0x152   :  { %862 = vmatprep.subr.bf16.mxu0 %v4797_v11  ;;  %v4878_v11 = vld [vmem:[#allocation4 + $0x144] ss:$8 sps:$4 sm:$0xff]  }
 0x155   :  { %863 = vmatpush1.bf16.msra.mxu0 %v4795_v12  ;;  %v4879_v12 = vld [vmem:[#allocation4 + $0x150] ss:$8 sps:$4 sm:$0xff]  }
 0x156   :  { %864 = vmatprep.subr.bf16.mxu0 %v4800_v13  ;;  %v4884_v13 = vld [vmem:[#allocation4 + $0x164] ss:$8 sps:$4 sm:$0xff]  }
 0x159   :  { %865 = vmatpush1.bf16.msra.mxu0 %v4798_v14  ;;  %v4885_v14 = vld [vmem:[#allocation4 + $0x170] ss:$8 sps:$4 sm:$0xff]  }
 0x15a   :  { %866 = vmatprep.subr.bf16.mxu0 %v4803_v15  ;;  %v4890_v15 = vld [vmem:[#allocation4 + $0x184] ss:$8 sps:$4 sm:$0xff]  }
 0x15d   :  { %867 = vmatpush1.bf16.msra.mxu0 %v4801_v16  ;;  %v4888_v16 = vld [vmem:[#allocation4 + $0x180] ss:$8 sps:$4 sm:$0xff]  }
 0x15e   :  { %868 = vmatprep.subr.bf16.mxu0 %v4806_v17  ;;  %v4896_v17 = vld [vmem:[#allocation4 + $0x1a4] ss:$8 sps:$4 sm:$0xff]  }
 0x161   :  { %869 = vmatpush1.bf16.msra.mxu0 %v4804_v20  ;;  %v4894_v20 = vld [vmem:[#allocation4 + $0x1a0] ss:$8 sps:$4 sm:$0xff]  }
 0x162   :  { %870 = vmatprep.subr.bf16.mxu0 %v4809_v21  ;;  %v4899_v21 = vld [vmem:[#allocation4 + $0x1b4] ss:$8 sps:$4 sm:$0xff]  }
 0x165   :  { %871 = vmatpush1.bf16.msra.mxu0 %v4807_v22  ;;  %v4897_v22 = vld [vmem:[#allocation4 + $0x1b0] ss:$8 sps:$4 sm:$0xff]  }
 0x166   :  { %872 = vmatprep.subr.bf16.mxu0 %v4812_v23  ;;  %v4900_v23 = vld [vmem:[#allocation4 + $0x1c0] ss:$8 sps:$4 sm:$0xff]  }
 0x169   :  { %873 = vmatpush1.bf16.msra.mxu0 %v4810_v24  ;;  %v4905_v24 = vld [vmem:[#allocation4 + $0x1d4] ss:$8 sps:$4 sm:$0xff]  }
 0x16a   :  { %874 = vmatprep.subr.bf16.mxu0 %v4815_v25  ;;  %v4903_v25 = vld [vmem:[#allocation4 + $0x1d0] ss:$8 sps:$4 sm:$0xff]  }
 0x16d   :  { %875 = vmatpush1.bf16.msra.mxu0 %v4813_v26  ;;  %v4908_v26 = vld [vmem:[#allocation4 + $0x1e4] ss:$8 sps:$4 sm:$0xff]  }
 0x16e   :  { %1110 = vmatprep.subr.bf16.mxu0 %v4818_v27  ;;  %v4906_v27 = vld [vmem:[#allocation4 + $0x1e0] ss:$8 sps:$4 sm:$0xff]  }
 0x170   :  { %877 = vmatmul.mubr.bf16.vlgmr.msra.gmra.mrb[32].mxu0 %v5460_v0 }
 0x171   :  { %886 = vmatprep.mubr.bf16.mxu0 %v5696_v5  ;;  %1111 = vmatpush1.bf16.msra.mxu0 %v4816_v28  ;;  %v4911_v28 = vld [vmem:[#allocation4 + $0x1f4] ss:$8 sps:$4 sm:$0xff]  }
 0x172   :  { %1112 = vmatprep.subr.bf16.mxu0 %v4821_v29  ;;  %v4909_v29 = vld [vmem:[#allocation4 + $0x1f0] ss:$8 sps:$4 sm:$0xff]  }
 0x175   :  { %1113 = vmatpush1.bf16.msra.mxu0 %v4819_v30  ;;  %v4914_v30 = vld [vmem:[#allocation4 + $0x4] ss:$8 sps:$4 sm:$0xff]  }
 0x176   :  { %1114 = vmatprep.subr.bf16.mxu0 %v4824_v31  ;;  %v4077_v31 = vld [vmem:[%s6104_s5 + $0x1] ss:$4 sm:$0x3] }
 0x178   :  { %887 = vmatmul.mubr.bf16.gmra.mrb[36].mxu0 %v5694_v4 }
 0x179   :  { %896 = vmatprep.mubr.bf16.mxu0 %v5704_v19  ;;  %1115 = vmatpush1.bf16.msra.mxu0 %v4822_v34  ;;  %v5947_v34 = vrot.slane %v4077_v31, %v5677_v50 }
 0x17a   :  { %1116 = vmatprep.subr.bf16.mxu0 %v4827_v35  ;;  %v5950_v35 = vrot.slane %v4077_v31, %v5682_v52 }
 0x17d   :  { %1117 = vmatpush1.bf16.msra.mxu0 %v4825_v36 }
 0x17e   :  { %1118 = vmatprep.subr.bf16.mxu0 %v4830_v37 }
 0x180   :  { %897 = vmatmul.mubr.bf16.gmra.mrb[40].mxu0 %v5702_v18 }
 0x181   :  { %906 = vmatprep.mubr.bf16.mxu0 %v5712_v33  ;;  %1119 = vmatpush1.bf16.msra.mxu0 %v4828_v38 }
 0x182   :  { %1120 = vmatprep.subr.bf16.mxu0 %v4833_v39 }
 0x185   :  { %1121 = vmatpush1.bf16.msra.mxu0 %v4831_v40 }
 0x186   :  { %1122 = vmatprep.subr.bf16.mxu0 %v4836_v41 }
 0x188   :  { %907 = vmatmul.mubr.bf16.gmra.mrb[44].mxu0 %v5710_v32 }
 0x189   :  { %1123 = vmatpush1.bf16.msra.mxu0 %v4834_v42  ;;  %1142 = vmatprep.mubr.bf16.mxu0 %v5696_v5  ;;  %v4843_v5 = vld [vmem:[%s6101_s2 + $0x290] ss:$8 sps:$4 sm:$0xff]  }
 0x18a   :  { %1124 = vmatprep.subr.bf16.mxu0 %v4839_v43 }
 0x18d   :  { %1125 = vmatpush1.bf16.msra.mxu0 %v4837_v44 }
 0x18e   :  { %1126 = vmatprep.subr.bf16.mxu0 %v4842_v45 }
 0x191   :  { %1127 = vmatpush1.bf16.msra.mxu0 %v4840_v48 }
 0x192   :  { %1128 = vmatprep.subr.bf16.mxu0 %v4845_v49 }
 0x195   :  { %1129 = vmatpush1.bf16.msra.mxu0 %v4843_v5 }
 0x196   :  { %1130 = vmatprep.subr.bf16.mxu0 %v4848_v51 }
 0x199   :  { %1131 = vmatpush1.bf16.msra.mxu0 %v4846_v55 }
 0x19a   :  { %1132 = vmatprep.subr.bf16.mxu0 %v4851_v56  ;;  %v4912_v56 = vld [vmem:[#allocation4] ss:$8 sps:$4 sm:$0xff]  }
 0x19d   :  { %1133 = vmatpush1.bf16.msra.mxu0 %v4849_v57 }
 0x19e   :  { %1134 = vmatprep.subr.bf16.mxu0 %v4854_v58 }
 0x1a1   :  { %1135 = vmatpush1.bf16.msra.mxu0 %v4852_v59  ;;  %v4917_v59 = vld [vmem:[#allocation4 + $0x14] ss:$8 sps:$4 sm:$0xff]  }
 0x1a2   :  { %1136 = vmatprep.subr.bf16.mxu0 %v4857_v60 }
 0x1a5   :  { %1137 = vmatpush1.bf16.msra.mxu0 %v4855_v61 }
 0x1a6   :  { %1138 = vmatprep.subr.bf16.mxu0 %v4860_v62 }
 0x1a9   :  { %1139 = vmatpush1.bf16.msra.mxu0 %v4858_v63 }
 0x1aa   :  { %1140 = vmatprep.subr.bf16.mxu0 %v4863_v1 }
 0x1ad   :  { %1141 = vmatpush1.bf16.msra.mxu0 %v4861_v2  ;;  %v4915_v2 = vld [vmem:[#allocation4 + $0x10] ss:$8 sps:$4 sm:$0xff]  }
 0x1ae   :  { %1478 = vmatprep.subr.bf16.mxu0 %v4866_v3 }
 0x1b0   :  { %1143 = vmatmul.mubr.bf16.vlgmr.msra.gmra.mrb[32].mxu0 %v5694_v4  ;;  %v4876_v4 = vld [vmem:[#allocation4 + $0x140] ss:$8 sps:$4 sm:$0xff]  }
 0x1b1   :  { %1152 = vmatprep.mubr.bf16.mxu0 %v5704_v19  ;;  %1479 = vmatpush1.bf16.msra.mxu0 %v4864_v6  ;;  %v4881_v19 = vld [vmem:[#allocation4 + $0x154] ss:$8 sps:$4 sm:$0xff]  }
 0x1b2   :  { %1480 = vmatprep.subr.bf16.mxu0 %v4869_v53  ;;  %v4920_v53 = vld [vmem:[#allocation4 + $0x24] ss:$8 sps:$4 sm:$0xff]  }
 0x1b5   :  { %1481 = vmatpush1.bf16.msra.mxu0 %v4867_v7 }
 0x1b6   :  { %1482 = vmatprep.subr.bf16.mxu0 %v4872_v8 }
 0x1b8   :  { %1153 = vmatmul.mubr.bf16.gmra.mrb[36].mxu0 %v5702_v18  ;;  %v4882_v18 = vld [vmem:[#allocation4 + $0x160] ss:$8 sps:$4 sm:$0xff]  }
 0x1b9   :  { %1162 = vmatprep.mubr.bf16.mxu0 %v5712_v33  ;;  %1483 = vmatpush1.bf16.msra.mxu0 %v4870_v54  ;;  %v4887_v33 = vld [vmem:[#allocation4 + $0x174] ss:$8 sps:$4 sm:$0xff]  }
 0x1ba   :  { %1484 = vmatprep.subr.bf16.mxu0 %v4875_v9 }
 0x1bd   :  { %1485 = vmatpush1.bf16.msra.mxu0 %v4873_v10 }
 0x1be   :  { %1486 = vmatprep.subr.bf16.mxu0 %v4878_v11  ;;  %v4918_v11 = vld [vmem:[#allocation4 + $0x20] ss:$8 sps:$4 sm:$0xff]  }
 0x1c0   :  { %1163 = vmatmul.mubr.bf16.gmra.mrb[40].mxu0 %v5710_v32  ;;  %v4893_v32 = vld [vmem:[#allocation4 + $0x194] ss:$8 sps:$4 sm:$0xff]  }
 0x1c1   :  { %1172 = vmatprep.mubr.bf16.mxu0 %v5720_v47  ;;  %1487 = vmatpush1.bf16.msra.mxu0 %v4876_v4  ;;  %v4891_v47 = vld [vmem:[#allocation4 + $0x190] ss:$8 sps:$4 sm:$0xff]  }
 0x1c2   :  { %1488 = vmatprep.subr.bf16.mxu0 %v4881_v19 }
 0x1c5   :  { %1489 = vmatpush1.bf16.msra.mxu0 %v4879_v12  ;;  %v4923_v12 = vld [vmem:[#allocation4 + $0x34] ss:$8 sps:$4 sm:$0xff]  }
 0x1c6   :  { %1490 = vmatprep.subr.bf16.mxu0 %v4884_v13 }
 0x1c8   :  { %1173 = vmatmul.mubr.bf16.gmra.mrb[44].mxu0 %v5718_v46  ;;  %v4902_v46 = vld [vmem:[#allocation4 + $0x1c4] ss:$8 sps:$4 sm:$0xff]  }
 0x1c9   :  { %1491 = vmatpush1.bf16.msra.mxu0 %v4882_v18 }
 0x1ca   :  { %1492 = vmatprep.subr.bf16.mxu0 %v4887_v33 }
 0x1cd   :  { %1493 = vmatpush1.bf16.msra.mxu0 %v4885_v14 }
 0x1ce   :  { %1494 = vmatprep.subr.bf16.mxu0 %v4890_v15 }
 0x1d1   :  { %1495 = vmatpush1.bf16.msra.mxu0 %v4888_v16  ;;  %v4921_v16 = vld [vmem:[#allocation4 + $0x30] ss:$8 sps:$4 sm:$0xff]  }
 0x1d2   :  { %1496 = vmatprep.subr.bf16.mxu0 %v4893_v32 }
 0x1d5   :  { %1497 = vmatpush1.bf16.msra.mxu0 %v4891_v47 }
 0x1d6   :  { %1498 = vmatprep.subr.bf16.mxu0 %v4896_v17  ;;  %v4926_v17 = vld [vmem:[#allocation4 + $0x44] ss:$8 sps:$4 sm:$0xff]  }
 0x1d9   :  { %1499 = vmatpush1.bf16.msra.mxu0 %v4894_v20 }
 0x1da   :  { %1500 = vmatprep.subr.bf16.mxu0 %v4899_v21 }
 0x1dd   :  { %1501 = vmatpush1.bf16.msra.mxu0 %v4897_v22 }
 0x1de   :  { %1502 = vmatprep.subr.bf16.mxu0 %v4902_v46 }
 0x1e1   :  { %1503 = vmatpush1.bf16.msra.mxu0 %v4900_v23 }
 0x1e2   :  { %1504 = vmatprep.subr.bf16.mxu0 %v4905_v24  ;;  %v4924_v24 = vld [vmem:[#allocation4 + $0x40] ss:$8 sps:$4 sm:$0xff]  }
 0x1e5   :  { %1505 = vmatpush1.bf16.msra.mxu0 %v4903_v25 }
 0x1e6   :  { %1506 = vmatprep.subr.bf16.mxu0 %v4908_v26 }
 0x1e9   :  { %1507 = vmatpush1.bf16.msra.mxu0 %v4906_v27  ;;  %v4929_v27 = vld [vmem:[#allocation4 + $0x54] ss:$8 sps:$4 sm:$0xff]  }
 0x1ea   :  { %1508 = vmatprep.subr.bf16.mxu0 %v4911_v28 }
 0x1ed   :  { %1509 = vmatpush1.bf16.msra.mxu0 %v4909_v29 }
 0x1ee   :  { %1800 = vmatprep.subr.bf16.mxu0 %v4914_v30 }
 0x283   :  { %v1144_v36 = vpop.f32.mrb[32].mxu0 }
 0x284   :  { %v1210_v37 = vadd.f32 %v5947_v34, %v1144_v36  ;;  %v1146_v38 = vpop.f32.mrb[33].mxu0 }
 0x285   :  { %v1211_v39 = vadd.f32 %v5950_v35, %v1146_v38  ;;  %v1148_v40 = vpop.f32.mrb[34].mxu0 }
 0x286   :  { %v1212_v41 = vadd.f32 %v5947_v34, %v1148_v40  ;;  %v1150_v42 = vpop.f32.mrb[35].mxu0  ;;  %v1226_v44 = vmax.f32 %v1210_v37, 0.0  ;;  %v4927_v37 = vld [vmem:[#allocation4 + $0x50] ss:$8 sps:$4 sm:$0xff]   ;;  %v4932_v40 = vld [vmem:[#allocation4 + $0x64] ss:$8 sps:$4 sm:$0xff]  }
 0x287   :  { %v1213_v43 = vadd.f32 %v5950_v35, %v1150_v42  ;;  %v1227_v48 = vmax.f32 %v1211_v39, 0.0 }
 0x288   :  { %v1228_v45 = vmax.f32 %v1212_v41, 0.0 }
 0x289   :  { %v1229_v49 = vmax.f32 %v1213_v43, 0.0 }
 0x28a   :  { %v5956_v5 = vpack.c.bf16 %v1228_v45, %v1226_v44  ;;  %v4930_v45 = vld [vmem:[#allocation4 + $0x60] ss:$8 sps:$4 sm:$0xff]  }
 0x28b   :  { %v5958_v51 = vpack.c.bf16 %v1229_v49, %v1227_v48  ;;  %v1154_v55 = vpop.f32.mrb[36].mxu0  ;;  %v5014_v48 = vld [vmem:[#allocation6 + $0x104] ss:$8 sps:$4 sm:$0xff]  }
 0x28c   :  { %v1214_v57 = vadd.f32 %v5947_v34, %v1154_v55  ;;  %v1156_v58 = vpop.f32.mrb[37].mxu0  ;;  %v4938_v49 = vld [vmem:[#allocation4 + $0x84] ss:$8 sps:$4 sm:$0xff]   ;;  %v5019_v55 = vld [vmem:[#allocation6 + $0x100] ss:$8 sps:$4 sm:$0xff]   ;;  %3736 = vmatprep.subr.bf16.mxu1 %v5014_v48 }
 0x28d   :  { %v1215_v60 = vadd.f32 %v5950_v35, %v1156_v58  ;;  %v1158_v61 = vpop.f32.mrb[38].mxu0  ;;  %1510 = vmatprep.mubr.bf16.mxu0 %v5958_v51  ;;  %3737 = vmatpush1.bf16.msra.mxu1 %v5019_v55  ;;  %v4936_v58 = vld [vmem:[#allocation4 + $0x80] ss:$8 sps:$4 sm:$0xff]   ;;  %v5086_v48 = vld [vmem:[#allocation6 + $0x1c4] ss:$8 sps:$4 sm:$0xff]  }
 0x28e   :  { %v1216_v62 = vadd.f32 %v5947_v34, %v1158_v61  ;;  %v1160_v63 = vpop.f32.mrb[39].mxu0  ;;  %1511 = vmatmul.mubr.bf16.vlgmr.msra.gmra.mrb[48].mxu0 %v5956_v5  ;;  %v1230_v3 = vmax.f32 %v1214_v57, 0.0  ;;  %v5025_v57 = vld [vmem:[#allocation6 + $0x110] ss:$8 sps:$4 sm:$0xff]   ;;  %v5031_v61 = vld [vmem:[#allocation6 + $0x120] ss:$8 sps:$4 sm:$0xff]  }
 0x28f   :  { %v1217_v1 = vadd.f32 %v5950_v35, %v1160_v63  ;;  %1801 = vmatpush1.bf16.msra.mxu0 %v4912_v56  ;;  %v1231_v7 = vmax.f32 %v1215_v60, 0.0  ;;  %v5020_v56 = vld [vmem:[#allocation6 + $0x114] ss:$8 sps:$4 sm:$0xff]   ;;  %v5091_v55 = vld [vmem:[#allocation6 + $0x1c0] ss:$8 sps:$4 sm:$0xff]  }
 0x290   :  { %v1232_v6 = vmax.f32 %v1216_v62, 0.0  ;;  %1802 = vmatprep.subr.bf16.mxu0 %v4917_v59  ;;  %3738 = vmatprep.subr.bf16.mxu1 %v5020_v56  ;;  %v5026_v59 = vld [vmem:[#allocation6 + $0x124] ss:$8 sps:$4 sm:$0xff]   ;;  %v4941_v60 = vld [vmem:[#allocation4 + $0x94] ss:$8 sps:$4 sm:$0xff]  }
 0x291   :  { %v1233_v8 = vmax.f32 %v1217_v1, 0.0  ;;  %3739 = vmatpush1.bf16.msra.mxu1 %v5025_v57  ;;  %v4939_v62 = vld [vmem:[#allocation4 + $0x90] ss:$8 sps:$4 sm:$0xff]   ;;  %v5032_v63 = vld [vmem:[#allocation6 + $0x134] ss:$8 sps:$4 sm:$0xff]  }
 0x292   :  { %v5966_v54 = vpack.c.bf16 %v1232_v6, %v1230_v3  ;;  %3740 = vmatprep.subr.bf16.mxu1 %v5026_v59  ;;  %v4944_v1 = vld [vmem:[#allocation4 + $0xa4] ss:$8 sps:$4 sm:$0xff]   ;;  %v4942_v3 = vld [vmem:[#allocation4 + $0xa0] ss:$8 sps:$4 sm:$0xff]   ;;  %v4983_v56 = vld [vmem:[#allocation4 + $0x274] ss:$8 sps:$4 sm:$0xff]  }
 0x293   :  { %v5968_v9 = vpack.c.bf16 %v1233_v8, %v1231_v7  ;;  %1803 = vmatpush1.bf16.msra.mxu0 %v4915_v2  ;;  %v1164_v10 = vpop.f32.mrb[40].mxu0  ;;  %v5037_v2 = vld [vmem:[#allocation6 + $0x130] ss:$8 sps:$4 sm:$0xff]   ;;  %v5038_v6 = vld [vmem:[#allocation6 + $0x144] ss:$8 sps:$4 sm:$0xff]  }
 0x294   :  { %v1218_v4 = vadd.f32 %v5947_v34, %v1164_v10  ;;  %v1166_v19 = vpop.f32.mrb[41].mxu0  ;;  %1804 = vmatprep.subr.bf16.mxu0 %v4920_v53  ;;  %v4947_v53 = vld [vmem:[#allocation4 + $0xb4] ss:$8 sps:$4 sm:$0xff]   ;;  %v5043_v7 = vld [vmem:[#allocation6 + $0x140] ss:$8 sps:$4 sm:$0xff]  }
 0x295   :  { %v1219_v13 = vadd.f32 %v5950_v35, %v1166_v19  ;;  %v1168_v18 = vpop.f32.mrb[42].mxu0  ;;  %1520 = vmatprep.mubr.bf16.mxu0 %v5968_v9  ;;  %3741 = vmatpush1.bf16.msra.mxu1 %v5031_v61  ;;  %v4945_v8 = vld [vmem:[#allocation4 + $0xb0] ss:$8 sps:$4 sm:$0xff]   ;;  %v5044_v10 = vld [vmem:[#allocation6 + $0x154] ss:$8 sps:$4 sm:$0xff]  }
 0x296   :  { %v1220_v33 = vadd.f32 %v5947_v34, %v1168_v18  ;;  %v1170_v14 = vpop.f32.mrb[43].mxu0  ;;  %1521 = vmatmul.mubr.bf16.gmra.mrb[52].mxu0 %v5966_v54  ;;  %v1234_v32 = vmax.f32 %v1218_v4, 0.0  ;;  %3742 = vmatprep.subr.bf16.mxu1 %v5032_v63  ;;  %v5049_v4 = vld [vmem:[#allocation6 + $0x150] ss:$8 sps:$4 sm:$0xff]   ;;  %v4948_v19 = vld [vmem:[#allocation4 + $0xc0] ss:$8 sps:$4 sm:$0xff]  }
 0x297   :  { %v1221_v15 = vadd.f32 %v5950_v35, %v1170_v14  ;;  %1805 = vmatpush1.bf16.msra.mxu0 %v4918_v11  ;;  %v1235_v20 = vmax.f32 %v1219_v13, 0.0  ;;  %v4950_v11 = vld [vmem:[#allocation4 + $0xc4] ss:$8 sps:$4 sm:$0xff]   ;;  %v4953_v13 = vld [vmem:[#allocation4 + $0xd4] ss:$8 sps:$4 sm:$0xff]  }
 0x298   :  { %v1236_v47 = vmax.f32 %v1220_v33, 0.0  ;;  %1806 = vmatprep.subr.bf16.mxu0 %v4923_v12  ;;  %v5050_v12 = vld [vmem:[#allocation6 + $0x164] ss:$8 sps:$4 sm:$0xff]   ;;  %v5055_v18 = vld [vmem:[#allocation6 + $0x160] ss:$8 sps:$4 sm:$0xff]  }
 0x299   :  { %v1237_v21 = vmax.f32 %v1221_v15, 0.0  ;;  %3743 = vmatpush1.bf16.msra.mxu1 %v5037_v2  ;;  %v4951_v33 = vld [vmem:[#allocation4 + $0xd0] ss:$8 sps:$4 sm:$0xff]   ;;  %v5056_v14 = vld [vmem:[#allocation6 + $0x174] ss:$8 sps:$4 sm:$0xff]  }
 0x29a   :  { %v5976_v22 = vpack.c.bf16 %v1236_v47, %v1234_v32  ;;  %3744 = vmatprep.subr.bf16.mxu1 %v5038_v6  ;;  %v4956_v15 = vld [vmem:[#allocation4 + $0xe4] ss:$8 sps:$4 sm:$0xff]   ;;  %v4954_v32 = vld [vmem:[#allocation4 + $0xe0] ss:$8 sps:$4 sm:$0xff]   ;;  %v5092_v57 = vld [vmem:[#allocation6 + $0x1d4] ss:$8 sps:$4 sm:$0xff]  }
 0x29b   :  { %v5978_v46 = vpack.c.bf16 %v1237_v21, %v1235_v20  ;;  %1807 = vmatpush1.bf16.msra.mxu0 %v4921_v16  ;;  %v1174_v23 = vpop.f32.mrb[44].mxu0  ;;  %v5061_v16 = vld [vmem:[#allocation6 + $0x170] ss:$8 sps:$4 sm:$0xff]   ;;  %v5062_v47 = vld [vmem:[#allocation6 + $0x184] ss:$8 sps:$4 sm:$0xff]  }
 0x29c   :  { %v1222_v25 = vadd.f32 %v5947_v34, %v1174_v23  ;;  %v1176_v26 = vpop.f32.mrb[45].mxu0  ;;  %1808 = vmatprep.subr.bf16.mxu0 %v4926_v17  ;;  %v4959_v17 = vld [vmem:[#allocation4 + $0xf4] ss:$8 sps:$4 sm:$0xff]   ;;  %v5067_v20 = vld [vmem:[#allocation6 + $0x180] ss:$8 sps:$4 sm:$0xff]  }
 0x29d   :  { %v1223_v28 = vadd.f32 %v5950_v35, %v1176_v26  ;;  %v1178_v29 = vpop.f32.mrb[46].mxu0  ;;  %1530 = vmatprep.mubr.bf16.mxu0 %v5978_v46  ;;  %3745 = vmatpush1.bf16.msra.mxu1 %v5043_v7  ;;  %v4957_v21 = vld [vmem:[#allocation4 + $0xf0] ss:$8 sps:$4 sm:$0xff]   ;;  %v5068_v23 = vld [vmem:[#allocation6 + $0x194] ss:$8 sps:$4 sm:$0xff]  }
 0x29e   :  { %v1224_v30 = vadd.f32 %v5947_v34, %v1178_v29  ;;  %v1180_v31 = vpop.f32.mrb[47].mxu0  ;;  %1531 = vmatmul.mubr.bf16.gmra.mrb[56].mxu0 %v5976_v22  ;;  %v1238_v38 = vmax.f32 %v1222_v25, 0.0  ;;  %v4935_v34 = vld [vmem:[#allocation4 + $0x74] ss:$8 sps:$4 sm:$0xff]   ;;  %3746 = vmatprep.subr.bf16.mxu1 %v5044_v10  ;;  %v5073_v25 = vld [vmem:[#allocation6 + $0x190] ss:$8 sps:$4 sm:$0xff]  }
 0x29f   :  { %v1225_v36 = vadd.f32 %v5950_v35, %v1180_v31  ;;  %1809 = vmatpush1.bf16.msra.mxu0 %v4924_v24  ;;  %v1239_v41 = vmax.f32 %v1223_v28, 0.0  ;;  %v4933_v35 = vld [vmem:[#allocation4 + $0x70] ss:$8 sps:$4 sm:$0xff]   ;;  %v4962_v24 = vld [vmem:[#allocation4 + $0x204] ss:$8 sps:$4 sm:$0xff]  }
 0x2a0   :  { %v1240_v39 = vmax.f32 %v1224_v30, 0.0  ;;  %1810 = vmatprep.subr.bf16.mxu0 %v4929_v27  ;;  %v4960_v26 = vld [vmem:[#allocation4 + $0x200] ss:$8 sps:$4 sm:$0xff]   ;;  %v4965_v27 = vld [vmem:[#allocation4 + $0x214] ss:$8 sps:$4 sm:$0xff]  }
 0x2a1   :  { %v1241_v42 = vmax.f32 %v1225_v36, 0.0  ;;  %3747 = vmatpush1.bf16.msra.mxu1 %v5049_v4  ;;  %v5074_v28 = vld [vmem:[#allocation6 + $0x1a4] ss:$8 sps:$4 sm:$0xff]   ;;  %v5079_v29 = vld [vmem:[#allocation6 + $0x1a0] ss:$8 sps:$4 sm:$0xff]  }
 0x2a2   :  { %v5986_v43 = vpack.c.bf16 %v1240_v39, %v1238_v38  ;;  %3748 = vmatprep.subr.bf16.mxu1 %v5050_v12  ;;  %v4963_v30 = vld [vmem:[#allocation4 + $0x210] ss:$8 sps:$4 sm:$0xff]   ;;  %v5080_v31 = vld [vmem:[#allocation6 + $0x1b4] ss:$8 sps:$4 sm:$0xff]   ;;  %v4968_v36 = vld [vmem:[#allocation4 + $0x224] ss:$8 sps:$4 sm:$0xff]  }
 0x2a3   :  { %v5988_v44 = vpack.c.bf16 %v1241_v42, %v1239_v41  ;;  %1811 = vmatpush1.bf16.msra.mxu0 %v4927_v37  ;;  %v5085_v37 = vld [vmem:[#allocation6 + $0x1b0] ss:$8 sps:$4 sm:$0xff]   ;;  %v4966_v38 = vld [vmem:[#allocation4 + $0x220] ss:$8 sps:$4 sm:$0xff]   ;;  %v4971_v39 = vld [vmem:[#allocation4 + $0x234] ss:$8 sps:$4 sm:$0xff]  }
 0x2a4   :  { %1812 = vmatprep.subr.bf16.mxu0 %v4932_v40  ;;  %v4969_v40 = vld [vmem:[#allocation4 + $0x230] ss:$8 sps:$4 sm:$0xff]   ;;  %v4974_v41 = vld [vmem:[#allocation4 + $0x244] ss:$8 sps:$4 sm:$0xff]   ;;  %v4972_v42 = vld [vmem:[#allocation4 + $0x240] ss:$8 sps:$4 sm:$0xff]  }
 0x2a5   :  { %1540 = vmatprep.mubr.bf16.mxu0 %v5988_v44  ;;  %3749 = vmatpush1.bf16.msra.mxu1 %v5055_v18  ;;  %v5097_v59 = vld [vmem:[#allocation6 + $0x1d0] ss:$8 sps:$4 sm:$0xff]   ;;  %v5098_v61 = vld [vmem:[#allocation6 + $0x1e4] ss:$8 sps:$4 sm:$0xff]   ;;  %v5100_v63 = vld [vmem:[#allocation6 + $0x1e0] ss:$8 sps:$4 sm:$0xff]  }
 0x2a6   :  { %1541 = vmatmul.mubr.bf16.gmra.mrb[60].mxu0 %v5986_v43  ;;  %3750 = vmatprep.subr.bf16.mxu1 %v5056_v14  ;;  %v5101_v2 = vld [vmem:[#allocation6 + $0x1f4] ss:$8 sps:$4 sm:$0xff]   ;;  %v5106_v6 = vld [vmem:[#allocation6 + $0x204] ss:$8 sps:$4 sm:$0xff]  }
 0x2a7   :  { %1813 = vmatpush1.bf16.msra.mxu0 %v4930_v45  ;;  %1832 = vmatprep.mubr.bf16.mxu0 %v5968_v9  ;;  %v4977_v45 = vld [vmem:[#allocation4 + $0x254] ss:$8 sps:$4 sm:$0xff]   ;;  %v4998_v10 = vld [vmem:[#allocation4 + $0x2c4] ss:$8 sps:$4 sm:$0xff]  }
 0x2a8   :  { %1814 = vmatprep.subr.bf16.mxu0 %v4935_v34  ;;  %v4975_v34 = vld [vmem:[#allocation4 + $0x250] ss:$8 sps:$4 sm:$0xff]   ;;  %v4995_v7 = vld [vmem:[#allocation4 + $0x2b4] ss:$8 sps:$4 sm:$0xff]   ;;  %v5004_v12 = vld [vmem:[#allocation4 + $0x2e4] ss:$8 sps:$4 sm:$0xff]  }
 0x2a9   :  { %3751 = vmatpush1.bf16.msra.mxu1 %v5061_v16  ;;  %v5001_v4 = vld [vmem:[#allocation4 + $0x2d4] ss:$8 sps:$4 sm:$0xff]   ;;  %v5010_v14 = vld [vmem:[#allocation6 + $0x4] ss:$8 sps:$4 sm:$0xff]  }
 0x2aa   :  { %3752 = vmatprep.subr.bf16.mxu1 %v5062_v47  ;;  %v5007_v18 = vld [vmem:[#allocation4 + $0x2f4] ss:$8 sps:$4 sm:$0xff]   ;;  %v5018_v47 = vld [vmem:[#allocation6 + $0x24] ss:$8 sps:$4 sm:$0xff]  }
 0x2ab   :  { %1815 = vmatpush1.bf16.msra.mxu0 %v4933_v35  ;;  %v4980_v35 = vld [vmem:[#allocation4 + $0x264] ss:$8 sps:$4 sm:$0xff]   ;;  %v5013_v16 = vld [vmem:[#allocation6 + $0x14] ss:$8 sps:$4 sm:$0xff]  }
 0x2ac   :  { %1816 = vmatprep.subr.bf16.mxu0 %v4938_v49  ;;  %v4978_v49 = vld [vmem:[#allocation4 + $0x260] ss:$8 sps:$4 sm:$0xff]  }
 0x2ad   :  { %3753 = vmatpush1.bf16.msra.mxu1 %v5067_v20  ;;  %v5024_v20 = vld [vmem:[#allocation6 + $0x34] ss:$8 sps:$4 sm:$0xff]  }
 0x2ae   :  { %3754 = vmatprep.subr.bf16.mxu1 %v5068_v23  ;;  %v5030_v23 = vld [vmem:[#allocation6 + $0x44] ss:$8 sps:$4 sm:$0xff]  }
 0x2af   :  { %1817 = vmatpush1.bf16.msra.mxu0 %v4936_v58  ;;  %v4981_v58 = vld [vmem:[#allocation4 + $0x270] ss:$8 sps:$4 sm:$0xff]  }
 0x2b0   :  { %1818 = vmatprep.subr.bf16.mxu0 %v4941_v60  ;;  %v4986_v60 = vld [vmem:[#allocation4 + $0x284] ss:$8 sps:$4 sm:$0xff]  }
 0x2b1   :  { %3755 = vmatpush1.bf16.msra.mxu1 %v5073_v25  ;;  %v5042_v25 = vld [vmem:[#allocation6 + $0x64] ss:$8 sps:$4 sm:$0xff]  }
 0x2b2   :  { %3756 = vmatprep.subr.bf16.mxu1 %v5074_v28  ;;  %v5052_v28 = vld [vmem:[#allocation6 + $0x80] ss:$8 sps:$4 sm:$0xff]  }
 0x2b3   :  { %1819 = vmatpush1.bf16.msra.mxu0 %v4939_v62  ;;  %v4984_v62 = vld [vmem:[#allocation4 + $0x280] ss:$8 sps:$4 sm:$0xff]  }
 0x2b4   :  { %1820 = vmatprep.subr.bf16.mxu0 %v4944_v1  ;;  %v4989_v1 = vld [vmem:[#allocation4 + $0x294] ss:$8 sps:$4 sm:$0xff]  }
 0x2b5   :  { %3757 = vmatpush1.bf16.msra.mxu1 %v5079_v29  ;;  %v5066_v29 = vld [vmem:[#allocation6 + $0xa4] ss:$8 sps:$4 sm:$0xff]  }
 0x2b6   :  { %3758 = vmatprep.subr.bf16.mxu1 %v5080_v31  ;;  %v5072_v31 = vld [vmem:[#allocation6 + $0xb4] ss:$8 sps:$4 sm:$0xff]  }
 0x2b7   :  { %1821 = vmatpush1.bf16.msra.mxu0 %v4942_v3  ;;  %v5103_v3 = vld [vmem:[#allocation6 + $0x1f0] ss:$8 sps:$4 sm:$0xff]  }
 0x2b8   :  { %1822 = vmatprep.subr.bf16.mxu0 %v4947_v53  ;;  %v4990_v53 = vld [vmem:[#allocation4 + $0x2a0] ss:$8 sps:$4 sm:$0xff]  }
 0x2b9   :  { %3759 = vmatpush1.bf16.msra.mxu1 %v5085_v37  ;;  %v5076_v37 = vld [vmem:[#allocation6 + $0xc0] ss:$8 sps:$4 sm:$0xff]  }
 0x2ba   :  { %3760 = vmatprep.subr.bf16.mxu1 %v5086_v48 }
 0x2bb   :  { %1823 = vmatpush1.bf16.msra.mxu0 %v4945_v8  ;;  %v4993_v8 = vld [vmem:[#allocation4 + $0x2b0] ss:$8 sps:$4 sm:$0xff]  }
 0x2bc   :  { %1824 = vmatprep.subr.bf16.mxu0 %v4950_v11  ;;  %v4996_v11 = vld [vmem:[#allocation4 + $0x2c0] ss:$8 sps:$4 sm:$0xff]  }
 0x2bd   :  { %3761 = vmatpush1.bf16.msra.mxu1 %v5091_v55 }
 0x2be   :  { %3762 = vmatprep.subr.bf16.mxu1 %v5092_v57 }
 0x2bf   :  { %1825 = vmatpush1.bf16.msra.mxu0 %v4948_v19  ;;  %v4999_v19 = vld [vmem:[#allocation4 + $0x2d0] ss:$8 sps:$4 sm:$0xff]  }
 0x2c0   :  { %1826 = vmatprep.subr.bf16.mxu0 %v4953_v13  ;;  %v5002_v13 = vld [vmem:[#allocation4 + $0x2e0] ss:$8 sps:$4 sm:$0xff]  }
 0x2c1   :  { %3763 = vmatpush1.bf16.msra.mxu1 %v5097_v59 }
 0x2c2   :  { %3764 = vmatprep.subr.bf16.mxu1 %v5098_v61 }
 0x2c3   :  { %1827 = vmatpush1.bf16.msra.mxu0 %v4951_v33  ;;  %v5005_v33 = vld [vmem:[#allocation4 + $0x2f0] ss:$8 sps:$4 sm:$0xff]  }
 0x2c4   :  { %1828 = vmatprep.subr.bf16.mxu0 %v4956_v15  ;;  %v5008_v15 = vld [vmem:[#allocation6] ss:$8 sps:$4 sm:$0xff]  }
 0x2c5   :  { %3765 = vmatpush1.bf16.msra.mxu1 %v5100_v63 }
 0x2c6   :  { %3766 = vmatprep.subr.bf16.mxu1 %v5101_v2 }
 0x2c7   :  { %1829 = vmatpush1.bf16.msra.mxu0 %v4954_v32  ;;  %v5011_v32 = vld [vmem:[#allocation6 + $0x10] ss:$8 sps:$4 sm:$0xff]  }
 0x2c8   :  { %1830 = vmatprep.subr.bf16.mxu0 %v4959_v17  ;;  %v5016_v17 = vld [vmem:[#allocation6 + $0x20] ss:$8 sps:$4 sm:$0xff]  }
 0x2c9   :  { %3767 = vmatpush1.bf16.msra.mxu1 %v5103_v3 }
 0x2ca   :  { %3779 = vmatprep.subr.bf16.mxu1 %v5106_v6 }
 0x2cb   :  { %1831 = vmatpush1.bf16.msra.mxu0 %v4957_v21  ;;  %v5022_v21 = vld [vmem:[#allocation6 + $0x30] ss:$8 sps:$4 sm:$0xff]  }
 0x2cc   :  { %2033 = vmatprep.subr.bf16.mxu0 %v4962_v24  ;;  %v5034_v24 = vld [vmem:[#allocation6 + $0x50] ss:$8 sps:$4 sm:$0xff]  }
 0x2ce   :  { %1833 = vmatmul.mubr.bf16.vlgmr.msra.gmra.mrb[64].mxu0 %v5966_v54 }
 0x2cf   :  { %1842 = vmatprep.mubr.bf16.mxu0 %v5978_v46  ;;  %2034 = vmatpush1.bf16.msra.mxu0 %v4960_v26  ;;  %v5046_v26 = vld [vmem:[#allocation6 + $0x70] ss:$8 sps:$4 sm:$0xff]  }
 0x2d0   :  { %2035 = vmatprep.subr.bf16.mxu0 %v4965_v27  ;;  %v5054_v27 = vld [vmem:[#allocation6 + $0x84] ss:$8 sps:$4 sm:$0xff]  }
 0x2d3   :  { %2036 = vmatpush1.bf16.msra.mxu0 %v4963_v30  ;;  %v5064_v30 = vld [vmem:[#allocation6 + $0xa0] ss:$8 sps:$4 sm:$0xff]  }
 0x2d4   :  { %2037 = vmatprep.subr.bf16.mxu0 %v4968_v36  ;;  %v5070_v36 = vld [vmem:[#allocation6 + $0xb0] ss:$8 sps:$4 sm:$0xff]  }
 0x2d6   :  { %1843 = vmatmul.mubr.bf16.gmra.mrb[68].mxu0 %v5976_v22 }
 0x2d7   :  { %1852 = vmatprep.mubr.bf16.mxu0 %v5988_v44  ;;  %2038 = vmatpush1.bf16.msra.mxu0 %v4966_v38  ;;  %v5084_v38 = vld [vmem:[#allocation6 + $0xd4] ss:$8 sps:$4 sm:$0xff]  }
 0x2d8   :  { %2039 = vmatprep.subr.bf16.mxu0 %v4971_v39  ;;  %v5082_v39 = vld [vmem:[#allocation6 + $0xd0] ss:$8 sps:$4 sm:$0xff]  }
 0x2db   :  { %2040 = vmatpush1.bf16.msra.mxu0 %v4969_v40  ;;  %v5090_v40 = vld [vmem:[#allocation6 + $0xe4] ss:$8 sps:$4 sm:$0xff]  }
 0x2dc   :  { %2041 = vmatprep.subr.bf16.mxu0 %v4974_v41  ;;  %v5088_v41 = vld [vmem:[#allocation6 + $0xe0] ss:$8 sps:$4 sm:$0xff]  }
 0x2de   :  { %1853 = vmatmul.mubr.bf16.gmra.mrb[72].mxu0 %v5986_v43 }
 0x2df   :  { %2042 = vmatpush1.bf16.msra.mxu0 %v4972_v42  ;;  %1862 = vmatprep.mubr.bf16.mxu0 %v5460_v0  ;;  %v5096_v42 = vld [vmem:[#allocation6 + $0xf4] ss:$8 sps:$4 sm:$0xff]  }
 0x2e0   :  { %2043 = vmatprep.subr.bf16.mxu0 %v4977_v45  ;;  %v5094_v45 = vld [vmem:[#allocation6 + $0xf0] ss:$8 sps:$4 sm:$0xff]  }
 0x2e3   :  { %2044 = vmatpush1.bf16.msra.mxu0 %v4975_v34  ;;  %v4078_v34 = vld [vmem:[%s6104_s5 + $0x2] ss:$4 sm:$0x3] }
 0x2e4   :  { %2045 = vmatprep.subr.bf16.mxu0 %v4980_v35  ;;  %v6012_v35 = vrot.slane %v4078_v34, %v5677_v50  ;;  %v6015_v48 = vrot.slane %v4078_v34, %v5682_v52  ;;  %v5118_v34 = vld [vmem:[#allocation6 + $0x244] ss:$8 sps:$4 sm:$0xff]  }
 0x2e6   :  { %1863 = vmatmul.mubr.bf16.gmra.mrb[76].mxu0 %v5460_v0  ;;  %v4987_v0 = vld [vmem:[#allocation4 + $0x290] ss:$8 sps:$4 sm:$0xff]  }
 0x2e7   :  { %2046 = vmatpush1.bf16.msra.mxu0 %v4978_v49  ;;  %2065 = vmatprep.mubr.bf16.mxu0 %v5958_v51  ;;  %v4992_v51 = vld [vmem:[#allocation4 + $0x2a4] ss:$8 sps:$4 sm:$0xff]  }
 0x2e8   :  { %2047 = vmatprep.subr.bf16.mxu0 %v4983_v56 }
 0x2eb   :  { %2048 = vmatpush1.bf16.msra.mxu0 %v4981_v58 }
 0x2ec   :  { %2049 = vmatprep.subr.bf16.mxu0 %v4986_v60 }
 0x2ef   :  { %2050 = vmatpush1.bf16.msra.mxu0 %v4984_v62 }
 0x2f0   :  { %2051 = vmatprep.subr.bf16.mxu0 %v4989_v1 }
 0x2f3   :  { %2052 = vmatpush1.bf16.msra.mxu0 %v4987_v0 }
 0x2f4   :  { %2053 = vmatprep.subr.bf16.mxu0 %v4992_v51 }
 0x2f7   :  { %2054 = vmatpush1.bf16.msra.mxu0 %v4990_v53 }
 0x2f8   :  { %2055 = vmatprep.subr.bf16.mxu0 %v4995_v7 }
 0x2fb   :  { %2056 = vmatpush1.bf16.msra.mxu0 %v4993_v8 }
 0x2fc   :  { %2057 = vmatprep.subr.bf16.mxu0 %v4998_v10 }
 0x2ff   :  { %2058 = vmatpush1.bf16.msra.mxu0 %v4996_v11 }
 0x300   :  { %2059 = vmatprep.subr.bf16.mxu0 %v5001_v4 }
 0x303   :  { %2060 = vmatpush1.bf16.msra.mxu0 %v4999_v19 }
 0x304   :  { %2061 = vmatprep.subr.bf16.mxu0 %v5004_v12 }
 0x307   :  { %2062 = vmatpush1.bf16.msra.mxu0 %v5002_v13 }
 0x308   :  { %2063 = vmatprep.subr.bf16.mxu0 %v5007_v18 }
 0x30b   :  { %2064 = vmatpush1.bf16.msra.mxu0 %v5005_v33 }
 0x30c   :  { %3693 = vmatprep.subr.bf16.mxu0 %v5010_v14 }
 0x30e   :  { %2066 = vmatmul.mubr.bf16.vlgmr.msra.gmra.mrb[64].mxu0 %v5956_v5  ;;  %v5028_v5 = vld [vmem:[#allocation6 + $0x40] ss:$8 sps:$4 sm:$0xff]  }
 0x30f   :  { %2075 = vmatprep.mubr.bf16.mxu0 %v5968_v9  ;;  %3694 = vmatpush1.bf16.msra.mxu0 %v5008_v15  ;;  %v5036_v9 = vld [vmem:[#allocation6 + $0x54] ss:$8 sps:$4 sm:$0xff]  }
 0x310   :  { %3695 = vmatprep.subr.bf16.mxu0 %v5013_v16  ;;  %v5104_v16 = vld [vmem:[#allocation6 + $0x200] ss:$8 sps:$4 sm:$0xff]  }
 0x313   :  { %3696 = vmatpush1.bf16.msra.mxu0 %v5011_v32 }
 0x314   :  { %3697 = vmatprep.subr.bf16.mxu0 %v5018_v47 }
 0x316   :  { %2076 = vmatmul.mubr.bf16.gmra.mrb[68].mxu0 %v5966_v54  ;;  %v5040_v54 = vld [vmem:[#allocation6 + $0x60] ss:$8 sps:$4 sm:$0xff]  }
 0x317   :  { %2085 = vmatprep.mubr.bf16.mxu0 %v5978_v46  ;;  %3698 = vmatpush1.bf16.msra.mxu0 %v5016_v17  ;;  %v5048_v46 = vld [vmem:[#allocation6 + $0x74] ss:$8 sps:$4 sm:$0xff]  }
 0x318   :  { %3699 = vmatprep.subr.bf16.mxu0 %v5024_v20  ;;  %v5109_v17 = vld [vmem:[#allocation6 + $0x214] ss:$8 sps:$4 sm:$0xff]  }
 0x31b   :  { %3700 = vmatpush1.bf16.msra.mxu0 %v5022_v21 }
 0x31c   :  { %3701 = vmatprep.subr.bf16.mxu0 %v5030_v23 }
 0x31e   :  { %2086 = vmatmul.mubr.bf16.gmra.mrb[72].mxu0 %v5976_v22  ;;  %v5060_v22 = vld [vmem:[#allocation6 + $0x94] ss:$8 sps:$4 sm:$0xff]  }
 0x31f   :  { %2095 = vmatprep.mubr.bf16.mxu0 %v5988_v44  ;;  %3702 = vmatpush1.bf16.msra.mxu0 %v5028_v5  ;;  %v5058_v44 = vld [vmem:[#allocation6 + $0x90] ss:$8 sps:$4 sm:$0xff]  }
 0x320   :  { %3703 = vmatprep.subr.bf16.mxu0 %v5036_v9 }
 0x323   :  { %3704 = vmatpush1.bf16.msra.mxu0 %v5034_v24  ;;  %v5107_v24 = vld [vmem:[#allocation6 + $0x210] ss:$8 sps:$4 sm:$0xff]  }
 0x324   :  { %3705 = vmatprep.subr.bf16.mxu0 %v5042_v25 }
 0x326   :  { %2096 = vmatmul.mubr.bf16.gmra.mrb[76].mxu0 %v5986_v43  ;;  %v5078_v43 = vld [vmem:[#allocation6 + $0xc4] ss:$8 sps:$4 sm:$0xff]  }
 0x327   :  { %3706 = vmatpush1.bf16.msra.mxu0 %v5040_v54 }
 0x328   :  { %3707 = vmatprep.subr.bf16.mxu0 %v5048_v46  ;;  %v5112_v46 = vld [vmem:[#allocation6 + $0x224] ss:$8 sps:$4 sm:$0xff]  }
 0x32b   :  { %3708 = vmatpush1.bf16.msra.mxu0 %v5046_v26 }
 0x32c   :  { %3709 = vmatprep.subr.bf16.mxu0 %v5054_v27 }
 0x32f   :  { %3710 = vmatpush1.bf16.msra.mxu0 %v5052_v28 }
 0x330   :  { %3711 = vmatprep.subr.bf16.mxu0 %v5060_v22 }
 0x333   :  { %3712 = vmatpush1.bf16.msra.mxu0 %v5058_v44 }
 0x334   :  { %3713 = vmatprep.subr.bf16.mxu0 %v5066_v29  ;;  %v5110_v29 = vld [vmem:[#allocation6 + $0x220] ss:$8 sps:$4 sm:$0xff]  }
 0x337   :  { %3714 = vmatpush1.bf16.msra.mxu0 %v5064_v30 }
 0x338   :  { %3715 = vmatprep.subr.bf16.mxu0 %v5072_v31 }
 0x33b   :  { %3716 = vmatpush1.bf16.msra.mxu0 %v5070_v36  ;;  %v5115_v36 = vld [vmem:[#allocation6 + $0x234] ss:$8 sps:$4 sm:$0xff]  }
 0x33c   :  { %3717 = vmatprep.subr.bf16.mxu0 %v5078_v43 }
 0x33f   :  { %3718 = vmatpush1.bf16.msra.mxu0 %v5076_v37 }
 0x340   :  { %3719 = vmatprep.subr.bf16.mxu0 %v5084_v38 }
 0x343   :  { %3720 = vmatpush1.bf16.msra.mxu0 %v5082_v39 }
 0x344   :  { %3721 = vmatprep.subr.bf16.mxu0 %v5090_v40 }
 0x347   :  { %3722 = vmatpush1.bf16.msra.mxu0 %v5088_v41  ;;  %v5113_v41 = vld [vmem:[#allocation6 + $0x230] ss:$8 sps:$4 sm:$0xff]  }
 0x348   :  { %3723 = vmatprep.subr.bf16.mxu0 %v5096_v42 }
 0x34b   :  { %3724 = vmatpush1.bf16.msra.mxu0 %v5094_v45 }
 0x361   :  { %v1512_v49 = vpop.f32.mrb[48].mxu0 }
 0x362   :  { %v1513_v55 = vadd.f32 %v1512_v49, %v6012_v35  ;;  %v1514_v56 = vpop.f32.mrb[49].mxu0 }
 0x363   :  { %v1515_v57 = vadd.f32 %v1514_v56, %v6015_v48  ;;  %v1516_v58 = vpop.f32.mrb[50].mxu0 }
 0x364   :  { %v1517_v59 = vadd.f32 %v1516_v58, %v6012_v35  ;;  %v1518_v60 = vpop.f32.mrb[51].mxu0  ;;  %v1551_v62 = vmax.f32 %v1513_v55, 0.0  ;;  %v5116_v58 = vld [vmem:[#allocation6 + $0x240] ss:$8 sps:$4 sm:$0xff]  }
 0x365   :  { %v1519_v61 = vadd.f32 %v1518_v60, %v6015_v48  ;;  %v1552_v1 = vmax.f32 %v1515_v57, 0.0  ;;  %v5119_v60 = vld [vmem:[#allocation6 + $0x250] ss:$8 sps:$4 sm:$0xff]  }
 0x366   :  { %v1553_v63 = vmax.f32 %v1517_v59, 0.0  ;;  %v5121_v59 = vld [vmem:[#allocation6 + $0x254] ss:$8 sps:$4 sm:$0xff]  }
 0x367   :  { %v1554_v2 = vmax.f32 %v1519_v61, 0.0  ;;  %v5124_v61 = vld [vmem:[#allocation6 + $0x264] ss:$8 sps:$4 sm:$0xff]  }
 0x368   :  { %v1567_v0 = vpack.c.bf16 %v1553_v63, %v1551_v62  ;;  %v5122_v62 = vld [vmem:[#allocation6 + $0x260] ss:$8 sps:$4 sm:$0xff]   ;;  %v5127_v63 = vld [vmem:[#allocation6 + $0x274] ss:$8 sps:$4 sm:$0xff]  }
 0x369   :  { %v1568_v3 = vpack.c.bf16 %v1554_v2, %v1552_v1  ;;  %v1522_v51 = vpop.f32.mrb[52].mxu0  ;;  %v5125_v1 = vld [vmem:[#allocation6 + $0x270] ss:$8 sps:$4 sm:$0xff]   ;;  %v5130_v2 = vld [vmem:[#allocation6 + $0x284] ss:$8 sps:$4 sm:$0xff]  }
 0x36a   :  { %v1523_v6 = vadd.f32 %v1522_v51, %v6012_v35  ;;  %v1524_v53 = vpop.f32.mrb[53].mxu0  ;;  %v5131_v51 = vld [vmem:[#allocation6 + $0x290] ss:$8 sps:$4 sm:$0xff]  }
 0x36b   :  { %v1525_v7 = vadd.f32 %v1524_v53, %v6015_v48  ;;  %v1526_v8 = vpop.f32.mrb[54].mxu0  ;;  %3725 = vmatprep.mubr.bf16.mxu0 %v1568_v3  ;;  %v5133_v3 = vld [vmem:[#allocation6 + $0x294] ss:$8 sps:$4 sm:$0xff]   ;;  %v5134_v53 = vld [vmem:[#allocation6 + $0x2a0] ss:$8 sps:$4 sm:$0xff]  }
 0x36c   :  { %v1527_v10 = vadd.f32 %v1526_v8, %v6012_v35  ;;  %v1528_v11 = vpop.f32.mrb[55].mxu0  ;;  %3726 = vmatmul.mubr.bf16.vlgmr.msra.gmra.mrb[80].mxu0 %v1567_v0  ;;  %v1555_v19 = vmax.f32 %v1523_v6, 0.0  ;;  %v5128_v0 = vld [vmem:[#allocation6 + $0x280] ss:$8 sps:$4 sm:$0xff]   ;;  %v5136_v6 = vld [vmem:[#allocation6 + $0x2a4] ss:$8 sps:$4 sm:$0xff]  }
 0x36d   :  { %v1529_v4 = vadd.f32 %v1528_v11, %v6015_v48  ;;  %v1556_v13 = vmax.f32 %v1525_v7, 0.0  ;;  %v5139_v7 = vld [vmem:[#allocation6 + $0x2b4] ss:$8 sps:$4 sm:$0xff]   ;;  %v5137_v8 = vld [vmem:[#allocation6 + $0x2b0] ss:$8 sps:$4 sm:$0xff]  }
 0x36e   :  { %v1557_v12 = vmax.f32 %v1527_v10, 0.0  ;;  %v5142_v10 = vld [vmem:[#allocation6 + $0x2c4] ss:$8 sps:$4 sm:$0xff]   ;;  %v5140_v11 = vld [vmem:[#allocation6 + $0x2c0] ss:$8 sps:$4 sm:$0xff]  }
 0x36f   :  { %v1558_v18 = vmax.f32 %v1529_v4, 0.0  ;;  %v5145_v4 = vld [vmem:[#allocation6 + $0x2d4] ss:$8 sps:$4 sm:$0xff]  }
 0x370   :  { %v1569_v33 = vpack.c.bf16 %v1557_v12, %v1555_v19  ;;  %v5143_v19 = vld [vmem:[#allocation6 + $0x2d0] ss:$8 sps:$4 sm:$0xff]   ;;  %v5148_v12 = vld [vmem:[#allocation6 + $0x2e4] ss:$8 sps:$4 sm:$0xff]  }
 0x371   :  { %v1532_v14 = vpop.f32.mrb[56].mxu0  ;;  %v1570_v15 = vpack.c.bf16 %v1558_v18, %v1556_v13  ;;  %v5146_v13 = vld [vmem:[#allocation6 + $0x2e0] ss:$8 sps:$4 sm:$0xff]   ;;  %v5151_v18 = vld [vmem:[#allocation6 + $0x2f4] ss:$8 sps:$4 sm:$0xff]  }
 0x372   :  { %v1533_v32 = vadd.f32 %v1532_v14, %v6012_v35  ;;  %v1534_v47 = vpop.f32.mrb[57].mxu0  ;;  %v5154_v14 = vld [vmem:[#allocation6 + $0x304] ss:$8 sps:$4 sm:$0xff]  }
 0x373   :  { %v1535_v20 = vadd.f32 %v1534_v47, %v6015_v48  ;;  %v1536_v21 = vpop.f32.mrb[58].mxu0  ;;  %3768 = vmatprep.mubr.bf16.mxu1 %v1570_v15  ;;  %v5152_v15 = vld [vmem:[#allocation6 + $0x300] ss:$8 sps:$4 sm:$0xff]   ;;  %v5160_v47 = vld [vmem:[#allocation6 + $0x324] ss:$8 sps:$4 sm:$0xff]  }
 0x374   :  { %v1537_v23 = vadd.f32 %v1536_v21, %v6012_v35  ;;  %v1538_v5 = vpop.f32.mrb[59].mxu0  ;;  %3769 = vmatmul.mubr.bf16.vlgmr.msra.gmra.mrb[0].mxu1 %v1569_v33  ;;  %v1559_v25 = vmax.f32 %v1533_v32, 0.0  ;;  %v5149_v33 = vld [vmem:[#allocation6 + $0x2f0] ss:$8 sps:$4 sm:$0xff]  }
 0x375   :  { %v1539_v9 = vadd.f32 %v1538_v5, %v6015_v48  ;;  %3780 = vmatpush1.bf16.msra.mxu1 %v5104_v16  ;;  %v1560_v26 = vmax.f32 %v1535_v20, 0.0  ;;  %v5157_v16 = vld [vmem:[#allocation6 + $0x314] ss:$8 sps:$4 sm:$0xff]   ;;  %v5155_v32 = vld [vmem:[#allocation6 + $0x310] ss:$8 sps:$4 sm:$0xff]  }
 0x376   :  { %v1561_v54 = vmax.f32 %v1537_v23, 0.0  ;;  %3781 = vmatprep.subr.bf16.mxu1 %v5109_v17  ;;  %v5158_v17 = vld [vmem:[#allocation6 + $0x320] ss:$8 sps:$4 sm:$0xff]   ;;  %v5163_v20 = vld [vmem:[#allocation6 + $0x334] ss:$8 sps:$4 sm:$0xff]  }
 0x377   :  { %v1562_v27 = vmax.f32 %v1539_v9, 0.0  ;;  %v5161_v21 = vld [vmem:[#allocation6 + $0x330] ss:$8 sps:$4 sm:$0xff]   ;;  %v5166_v23 = vld [vmem:[#allocation6 + $0x344] ss:$8 sps:$4 sm:$0xff]  }
 0x378   :  { %v6029_v28 = vpack.c.bf16 %v1561_v54, %v1559_v25  ;;  %v5164_v5 = vld [vmem:[#allocation6 + $0x340] ss:$8 sps:$4 sm:$0xff]   ;;  %v5169_v9 = vld [vmem:[#allocation6 + $0x354] ss:$8 sps:$4 sm:$0xff]   ;;  %v5172_v25 = vld [vmem:[#allocation6 + $0x364] ss:$8 sps:$4 sm:$0xff]  }
 0x379   :  { %v1572_v22 = vpack.c.bf16 %v1562_v27, %v1560_v26  ;;  %3782 = vmatpush1.bf16.msra.mxu1 %v5107_v24  ;;  %v1542_v44 = vpop.f32.mrb[60].mxu0  ;;  %v5167_v24 = vld [vmem:[#allocation6 + $0x350] ss:$8 sps:$4 sm:$0xff]   ;;  %v5170_v54 = vld [vmem:[#allocation6 + $0x360] ss:$8 sps:$4 sm:$0xff]  }
 0x37a   :  { %v1543_v30 = vadd.f32 %v1542_v44, %v6012_v35  ;;  %v1544_v31 = vpop.f32.mrb[61].mxu0  ;;  %3783 = vmatprep.subr.bf16.mxu1 %v5112_v46  ;;  %v5175_v46 = vld [vmem:[#allocation6 + $0x374] ss:$8 sps:$4 sm:$0xff]   ;;  %v5173_v26 = vld [vmem:[#allocation6 + $0x370] ss:$8 sps:$4 sm:$0xff]  }
 0x37b   :  { %v1545_v43 = vadd.f32 %v1544_v31, %v6015_v48  ;;  %v1546_v37 = vpop.f32.mrb[62].mxu0  ;;  %3811 = vmatprep.mubr.bf16.mxu1 %v1572_v22  ;;  %v5178_v27 = vld [vmem:[#allocation6 + $0x384] ss:$8 sps:$4 sm:$0xff]   ;;  %v5181_v22 = vld [vmem:[#allocation6 + $0x394] ss:$8 sps:$4 sm:$0xff]  }
 0x37c   :  { %v1547_v38 = vadd.f32 %v1546_v37, %v6012_v35  ;;  %v1548_v39 = vpop.f32.mrb[63].mxu0  ;;  %v1563_v42 = vmax.f32 %v1543_v30, 0.0  ;;  %v5179_v44 = vld [vmem:[#allocation6 + $0x390] ss:$8 sps:$4 sm:$0xff]   ;;  %v5182_v30 = vld [vmem:[#allocation6 + $0x3a0] ss:$8 sps:$4 sm:$0xff]  }
 0x37d   :  { %v1549_v40 = vadd.f32 %v1548_v39, %v6015_v48  ;;  %3784 = vmatpush1.bf16.msra.mxu1 %v5110_v29  ;;  %v1564_v49 = vmax.f32 %v1545_v43, 0.0  ;;  %v5184_v29 = vld [vmem:[#allocation6 + $0x3a4] ss:$8 sps:$4 sm:$0xff]   ;;  %v5187_v31 = vld [vmem:[#allocation6 + $0x3b4] ss:$8 sps:$4 sm:$0xff]  }
 0x37e   :  { %v1565_v45 = vmax.f32 %v1547_v38, 0.0  ;;  %3785 = vmatprep.subr.bf16.mxu1 %v5115_v36  ;;  %v5185_v36 = vld [vmem:[#allocation6 + $0x3b0] ss:$8 sps:$4 sm:$0xff]   ;;  %v5190_v43 = vld [vmem:[#allocation6 + $0x3c4] ss:$8 sps:$4 sm:$0xff]  }
 0x37f   :  { %v1566_v55 = vmax.f32 %v1549_v40, 0.0  ;;  %v5188_v38 = vld [vmem:[#allocation6 + $0x3c0] ss:$8 sps:$4 sm:$0xff]  }
 0x380   :  { %v6035_v56 = vpack.c.bf16 %v1565_v45, %v1563_v42 }
 0x381   :  { %v1574_v57 = vpack.c.bf16 %v1566_v55, %v1564_v49  ;;  %3786 = vmatpush1.bf16.msra.mxu1 %v5113_v41  ;;  %v5193_v41 = vld [vmem:[#allocation6 + $0x3d4] ss:$8 sps:$4 sm:$0xff]  }
 0x382   :  { %3787 = vmatprep.subr.bf16.mxu1 %v5118_v34 }
 0x385   :  { %3788 = vmatpush1.bf16.msra.mxu1 %v5116_v58 }
 0x386   :  { %3789 = vmatprep.subr.bf16.mxu1 %v5121_v59 }
 0x389   :  { %3790 = vmatpush1.bf16.msra.mxu1 %v5119_v60  ;;  %v5196_v60 = vld [vmem:[#allocation6 + $0x3e4] ss:$8 sps:$4 sm:$0xff]  }
 0x38a   :  { %3791 = vmatprep.subr.bf16.mxu1 %v5124_v61 }
 0x38d   :  { %3792 = vmatpush1.bf16.msra.mxu1 %v5122_v62 }
 0x38e   :  { %3793 = vmatprep.subr.bf16.mxu1 %v5127_v63 }
 0x391   :  { %3794 = vmatpush1.bf16.msra.mxu1 %v5125_v1 }
 0x392   :  { %3795 = vmatprep.subr.bf16.mxu1 %v5130_v2 }
 0x395   :  { %3796 = vmatpush1.bf16.msra.mxu1 %v5128_v0  ;;  %v5194_v0 = vld [vmem:[#allocation6 + $0x3e0] ss:$8 sps:$4 sm:$0xff]  }
 0x396   :  { %3797 = vmatprep.subr.bf16.mxu1 %v5133_v3 }
 0x399   :  { %3798 = vmatpush1.bf16.msra.mxu1 %v5131_v51 }
 0x39a   :  { %3799 = vmatprep.subr.bf16.mxu1 %v5136_v6  ;;  %v5199_v6 = vld [vmem:[#allocation6 + $0x3f4] ss:$8 sps:$4 sm:$0xff]  }
 0x39d   :  { %3800 = vmatpush1.bf16.msra.mxu1 %v5134_v53 }
 0x39e   :  { %3801 = vmatprep.subr.bf16.mxu1 %v5139_v7 }
 0x3a1   :  { %3802 = vmatpush1.bf16.msra.mxu1 %v5137_v8 }
 0x3a2   :  { %3803 = vmatprep.subr.bf16.mxu1 %v5142_v10 }
 0x3a5   :  { %3804 = vmatpush1.bf16.msra.mxu1 %v5140_v11 }
 0x3a6   :  { %3805 = vmatprep.subr.bf16.mxu1 %v5145_v4  ;;  %v5197_v4 = vld [vmem:[#allocation6 + $0x3f0] ss:$8 sps:$4 sm:$0xff]  }
 0x3a9   :  { %3806 = vmatpush1.bf16.msra.mxu1 %v5143_v19 }
 0x3aa   :  { %3807 = vmatprep.subr.bf16.mxu1 %v5148_v12 }
 0x3ad   :  { %3808 = vmatpush1.bf16.msra.mxu1 %v5146_v13  ;;  %v5202_v13 = vld [vmem:[#allocation6 + $0x404] ss:$8 sps:$4 sm:$0xff]  }
 0x3ae   :  { %3809 = vmatprep.subr.bf16.mxu1 %v5151_v18 }
 0x3b1   :  { %3810 = vmatpush1.bf16.msra.mxu1 %v5149_v33 }
 0x3b2   :  { %3822 = vmatprep.subr.bf16.mxu1 %v5154_v14 }
 0x3b4   :  { %3812 = vmatmul.mubr.bf16.vlgmr.msra.gmra.mrb[0].mxu1 %v6029_v28  ;;  %v5176_v28 = vld [vmem:[#allocation6 + $0x380] ss:$8 sps:$4 sm:$0xff]  }
 0x3b5   :  { %3823 = vmatpush1.bf16.msra.mxu1 %v5152_v15  ;;  %3854 = vmatprep.mubr.bf16.mxu1 %v1574_v57  ;;  %v5191_v57 = vld [vmem:[#allocation6 + $0x3d0] ss:$8 sps:$4 sm:$0xff]  }
 0x3b6   :  { %3824 = vmatprep.subr.bf16.mxu1 %v5157_v16 }
 0x3b9   :  { %3825 = vmatpush1.bf16.msra.mxu1 %v5155_v32  ;;  %v5200_v32 = vld [vmem:[#allocation6 + $0x400] ss:$8 sps:$4 sm:$0xff]  }
 0x3ba   :  { %3826 = vmatprep.subr.bf16.mxu1 %v5160_v47 }
 0x3bd   :  { %3827 = vmatpush1.bf16.msra.mxu1 %v5158_v17 }
 0x3be   :  { %3828 = vmatprep.subr.bf16.mxu1 %v5163_v20  ;;  %v5205_v20 = vld [vmem:[#allocation6 + $0x414] ss:$8 sps:$4 sm:$0xff]  }
 0x3c1   :  { %3829 = vmatpush1.bf16.msra.mxu1 %v5161_v21 }
 0x3c2   :  { %3830 = vmatprep.subr.bf16.mxu1 %v5166_v23 }
 0x3c5   :  { %3831 = vmatpush1.bf16.msra.mxu1 %v5164_v5 }
 0x3c6   :  { %3832 = vmatprep.subr.bf16.mxu1 %v5169_v9 }
 0x3c9   :  { %3833 = vmatpush1.bf16.msra.mxu1 %v5167_v24 }
 0x3ca   :  { %3834 = vmatprep.subr.bf16.mxu1 %v5172_v25  ;;  %v5203_v25 = vld [vmem:[#allocation6 + $0x410] ss:$8 sps:$4 sm:$0xff]  }
 0x3cd   :  { %3835 = vmatpush1.bf16.msra.mxu1 %v5170_v54 }
 0x3ce   :  { %3836 = vmatprep.subr.bf16.mxu1 %v5175_v46 }
 0x3d1   :  { %3837 = vmatpush1.bf16.msra.mxu1 %v5173_v26  ;;  %v5208_v26 = vld [vmem:[#allocation6 + $0x424] ss:$8 sps:$4 sm:$0xff]  }
 0x3d2   :  { %3838 = vmatprep.subr.bf16.mxu1 %v5178_v27 }
 0x3d5   :  { %3839 = vmatpush1.bf16.msra.mxu1 %v5176_v28 }
 0x3d6   :  { %3840 = vmatprep.subr.bf16.mxu1 %v5181_v22 }
 0x3d9   :  { %3841 = vmatpush1.bf16.msra.mxu1 %v5179_v44 }
 0x3da   :  { %3842 = vmatprep.subr.bf16.mxu1 %v5184_v29 }
 0x3dd   :  { %3843 = vmatpush1.bf16.msra.mxu1 %v5182_v30  ;;  %v5206_v30 = vld [vmem:[#allocation6 + $0x420] ss:$8 sps:$4 sm:$0xff]  }
 0x3de   :  { %3844 = vmatprep.subr.bf16.mxu1 %v5187_v31 }
 0x3e1   :  { %v2067_v37 = vpop.f32.mrb[64].mxu0  ;;  %3845 = vmatpush1.bf16.msra.mxu1 %v5185_v36  ;;  %v5211_v36 = vld [vmem:[#allocation6 + $0x434] ss:$8 sps:$4 sm:$0xff]  }
 0x3e2   :  { %v2106_v39 = vadd.f32 %v2067_v37, %v6012_v35  ;;  %v2069_v40 = vpop.f32.mrb[65].mxu0  ;;  %3846 = vmatprep.subr.bf16.mxu1 %v5190_v43 }
 0x3e3   :  { %v2107_v42 = vadd.f32 %v2069_v40, %v6015_v48  ;;  %v2071_v45 = vpop.f32.mrb[66].mxu0 }
 0x3e4   :  { %v2108_v34 = vadd.f32 %v2071_v45, %v6012_v35  ;;  %v2073_v49 = vpop.f32.mrb[67].mxu0  ;;  %v2122_v58 = vmax.f32 %v2106_v39, 0.0 }
 0x3e5   :  { %v2109_v55 = vadd.f32 %v2073_v49, %v6015_v48  ;;  %3847 = vmatpush1.bf16.msra.mxu1 %v5188_v38  ;;  %v2123_v61 = vmax.f32 %v2107_v42, 0.0 }
 0x3e6   :  { %v2124_v59 = vmax.f32 %v2108_v34, 0.0  ;;  %3848 = vmatprep.subr.bf16.mxu1 %v5193_v41  ;;  %v5209_v41 = vld [vmem:[#allocation6 + $0x430] ss:$8 sps:$4 sm:$0xff]   ;;  %v5214_v34 = vld [vmem:[#allocation6 + $0x444] ss:$8 sps:$4 sm:$0xff]  }
 0x3e7   :  { %v2125_v62 = vmax.f32 %v2109_v55, 0.0 }
 0x3e8   :  { %v6042_v63 = vpack.c.bf16 %v2124_v59, %v2122_v58  ;;  %v5212_v59 = vld [vmem:[#allocation6 + $0x440] ss:$8 sps:$4 sm:$0xff]  }
 0x3e9   :  { %v2139_v1 = vpack.c.bf16 %v2125_v62, %v2123_v61  ;;  %v2077_v2 = vpop.f32.mrb[68].mxu0  ;;  %3849 = vmatpush1.bf16.msra.mxu1 %v5191_v57  ;;  %v5218_v61 = vld [vmem:[#allocation6 + $0x460] ss:$8 sps:$4 sm:$0xff]   ;;  %v5223_v62 = vld [vmem:[#allocation6 + $0x474] ss:$8 sps:$4 sm:$0xff]  }
 0x3ea   :  { %v2110_v3 = vadd.f32 %v2077_v2, %v6012_v35  ;;  %v2079_v51 = vpop.f32.mrb[69].mxu0  ;;  %3850 = vmatprep.subr.bf16.mxu1 %v5196_v60  ;;  %v5217_v60 = vld [vmem:[#allocation6 + $0x454] ss:$8 sps:$4 sm:$0xff]   ;;  %v5226_v2 = vld [vmem:[#allocation6 + $0x484] ss:$8 sps:$4 sm:$0xff]  }
 0x3eb   :  { %v2111_v53 = vadd.f32 %v2079_v51, %v6015_v48  ;;  %v2081_v7 = vpop.f32.mrb[70].mxu0  ;;  %v5227_v51 = vld [vmem:[#allocation6 + $0x490] ss:$8 sps:$4 sm:$0xff]  }
 0x3ec   :  { %v2112_v8 = vadd.f32 %v2081_v7, %v6012_v35  ;;  %v2083_v10 = vpop.f32.mrb[71].mxu0  ;;  %v2126_v19 = vmax.f32 %v2110_v3, 0.0  ;;  %v5229_v3 = vld [vmem:[#allocation6 + $0x494] ss:$8 sps:$4 sm:$0xff]  }
 0x3ed   :  { %v2113_v11 = vadd.f32 %v2083_v10, %v6015_v48  ;;  %3851 = vmatpush1.bf16.msra.mxu1 %v5194_v0  ;;  %v2127_v18 = vmax.f32 %v2111_v53, 0.0  ;;  %v5224_v0 = vld [vmem:[#allocation6 + $0x480] ss:$8 sps:$4 sm:$0xff]   ;;  %v5235_v7 = vld [vmem:[#allocation6 + $0x4b4] ss:$8 sps:$4 sm:$0xff]  }
 0x3ee   :  { %v2128_v12 = vmax.f32 %v2112_v8, 0.0  ;;  %3852 = vmatprep.subr.bf16.mxu1 %v5199_v6  ;;  %v5232_v6 = vld [vmem:[#allocation6 + $0x4a4] ss:$8 sps:$4 sm:$0xff]   ;;  %v5230_v53 = vld [vmem:[#allocation6 + $0x4a0] ss:$8 sps:$4 sm:$0xff]  }
 0x3ef   :  { %v2129_v33 = vmax.f32 %v2113_v11, 0.0  ;;  %v5233_v8 = vld [vmem:[#allocation6 + $0x4b0] ss:$8 sps:$4 sm:$0xff]   ;;  %v5238_v10 = vld [vmem:[#allocation6 + $0x4c4] ss:$8 sps:$4 sm:$0xff]  }
 0x3f0   :  { %v6048_v14 = vpack.c.bf16 %v2128_v12, %v2126_v19  ;;  %v5236_v11 = vld [vmem:[#allocation6 + $0x4c0] ss:$8 sps:$4 sm:$0xff]   ;;  %v5239_v19 = vld [vmem:[#allocation6 + $0x4d0] ss:$8 sps:$4 sm:$0xff]   ;;  %v5244_v12 = vld [vmem:[#allocation6 + $0x4e4] ss:$8 sps:$4 sm:$0xff]  }
 0x3f1   :  { %v6050_v15 = vpack.c.bf16 %v2129_v33, %v2127_v18  ;;  %v2087_v16 = vpop.f32.mrb[72].mxu0  ;;  %3853 = vmatpush1.bf16.msra.mxu1 %v5197_v4  ;;  %v5241_v4 = vld [vmem:[#allocation6 + $0x4d4] ss:$8 sps:$4 sm:$0xff]   ;;  %v5245_v33 = vld [vmem:[#allocation6 + $0x4f0] ss:$8 sps:$4 sm:$0xff]  }
 0x3f2   :  { %v2114_v47 = vadd.f32 %v2087_v16, %v6012_v35  ;;  %v2089_v17 = vpop.f32.mrb[73].mxu0  ;;  %3865 = vmatprep.subr.bf16.mxu1 %v5202_v13  ;;  %v5242_v13 = vld [vmem:[#allocation6 + $0x4e0] ss:$8 sps:$4 sm:$0xff]   ;;  %v5247_v18 = vld [vmem:[#allocation6 + $0x4f4] ss:$8 sps:$4 sm:$0xff]  }
 0x3f3   :  { %v2115_v21 = vadd.f32 %v2089_v17, %v6015_v48  ;;  %v2091_v23 = vpop.f32.mrb[74].mxu0  ;;  %v5250_v16 = vld [vmem:[#allocation6 + $0x504] ss:$8 sps:$4 sm:$0xff]   ;;  %v5251_v17 = vld [vmem:[#allocation6 + $0x510] ss:$8 sps:$4 sm:$0xff]  }
 0x3f4   :  { %v2116_v5 = vadd.f32 %v2091_v23, %v6012_v35  ;;  %v2093_v9 = vpop.f32.mrb[75].mxu0  ;;  %3855 = vmatmul.mubr.bf16.vlgmr.msra.gmra.mrb[0].mxu1 %v6035_v56  ;;  %v2130_v54 = vmax.f32 %v2114_v47, 0.0  ;;  %v5253_v47 = vld [vmem:[#allocation6 + $0x514] ss:$8 sps:$4 sm:$0xff]  }
 0x3f5   :  { %v2117_v24 = vadd.f32 %v2093_v9, %v6015_v48  ;;  %3866 = vmatpush1.bf16.msra.mxu1 %v5200_v32  ;;  %3897 = vmatprep.mubr.bf16.mxu1 %v2139_v1  ;;  %v2131_v27 = vmax.f32 %v2115_v21, 0.0  ;;  %v5221_v1 = vld [vmem:[#allocation6 + $0x470] ss:$8 sps:$4 sm:$0xff]   ;;  %v5248_v32 = vld [vmem:[#allocation6 + $0x500] ss:$8 sps:$4 sm:$0xff]  }
 0x3f6   :  { %v2132_v46 = vmax.f32 %v2116_v5, 0.0  ;;  %3867 = vmatprep.subr.bf16.mxu1 %v5205_v20  ;;  %v5256_v20 = vld [vmem:[#allocation6 + $0x524] ss:$8 sps:$4 sm:$0xff]   ;;  %v5254_v21 = vld [vmem:[#allocation6 + $0x520] ss:$8 sps:$4 sm:$0xff]  }
 0x3f7   :  { %v2133_v28 = vmax.f32 %v2117_v24, 0.0  ;;  %v5259_v23 = vld [vmem:[#allocation6 + $0x534] ss:$8 sps:$4 sm:$0xff]   ;;  %v5257_v5 = vld [vmem:[#allocation6 + $0x530] ss:$8 sps:$4 sm:$0xff]  }
 0x3f8   :  { %v6057_v22 = vpack.c.bf16 %v2132_v46, %v2130_v54  ;;  %v5262_v9 = vld [vmem:[#allocation6 + $0x544] ss:$8 sps:$4 sm:$0xff]   ;;  %v5260_v54 = vld [vmem:[#allocation6 + $0x540] ss:$8 sps:$4 sm:$0xff]   ;;  %v5265_v46 = vld [vmem:[#allocation6 + $0x554] ss:$8 sps:$4 sm:$0xff]  }
 0x3f9   :  { %v6059_v44 = vpack.c.bf16 %v2133_v28, %v2131_v27  ;;  %v2097_v29 = vpop.f32.mrb[76].mxu0  ;;  %3868 = vmatpush1.bf16.msra.mxu1 %v5203_v25  ;;  %v5268_v27 = vld [vmem:[#allocation6 + $0x564] ss:$8 sps:$4 sm:$0xff]   ;;  %v5266_v28 = vld [vmem:[#allocation6 + $0x560] ss:$8 sps:$4 sm:$0xff]  }
 0x3fa   :  { %v2118_v56 = vadd.f32 %v2097_v29, %v6012_v35  ;;  %v2099_v31 = vpop.f32.mrb[77].mxu0  ;;  %3869 = vmatprep.subr.bf16.mxu1 %v5208_v26  ;;  %v5263_v26 = vld [vmem:[#allocation6 + $0x550] ss:$8 sps:$4 sm:$0xff]   ;;  %v5271_v29 = vld [vmem:[#allocation6 + $0x574] ss:$8 sps:$4 sm:$0xff]  }
 0x3fb   :  { %v2119_v43 = vadd.f32 %v2099_v31, %v6015_v48  ;;  %v2101_v37 = vpop.f32.mrb[78].mxu0  ;;  %v5272_v31 = vld [vmem:[#allocation6 + $0x580] ss:$8 sps:$4 sm:$0xff]  }
 0x3fc   :  { %v2120_v38 = vadd.f32 %v2101_v37, %v6012_v35  ;;  %v2103_v39 = vpop.f32.mrb[79].mxu0  ;;  %v2134_v42 = vmax.f32 %v2118_v56, 0.0  ;;  %v5215_v35 = vld [vmem:[#allocation6 + $0x450] ss:$8 sps:$4 sm:$0xff]   ;;  %v5274_v56 = vld [vmem:[#allocation6 + $0x584] ss:$8 sps:$4 sm:$0xff]  }
 0x3fd   :  { %v2121_v40 = vadd.f32 %v2103_v39, %v6015_v48  ;;  %3870 = vmatpush1.bf16.msra.mxu1 %v5206_v30  ;;  %v2135_v49 = vmax.f32 %v2119_v43, 0.0  ;;  %v5220_v48 = vld [vmem:[#allocation6 + $0x464] ss:$8 sps:$4 sm:$0xff]   ;;  %v5269_v30 = vld [vmem:[#allocation6 + $0x570] ss:$8 sps:$4 sm:$0xff]  }
 0x3fe   :  { %v2136_v45 = vmax.f32 %v2120_v38, 0.0  ;;  %3871 = vmatprep.subr.bf16.mxu1 %v5211_v36  ;;  %v5277_v36 = vld [vmem:[#allocation6 + $0x594] ss:$8 sps:$4 sm:$0xff]   ;;  %v5275_v43 = vld [vmem:[#allocation6 + $0x590] ss:$8 sps:$4 sm:$0xff]  }
 0x3ff   :  { %v2137_v55 = vmax.f32 %v2121_v40, 0.0  ;;  %v5280_v37 = vld [vmem:[#allocation6 + $0x5a4] ss:$8 sps:$4 sm:$0xff]   ;;  %v5278_v38 = vld [vmem:[#allocation6 + $0x5a0] ss:$8 sps:$4 sm:$0xff]  }
 0x400   :  { %v6065_v57 = vpack.c.bf16 %v2136_v45, %v2134_v42  ;;  %v5283_v39 = vld [vmem:[#allocation6 + $0x5b4] ss:$8 sps:$4 sm:$0xff]   ;;  %v5281_v40 = vld [vmem:[#allocation6 + $0x5b0] ss:$8 sps:$4 sm:$0xff]   ;;  %v5284_v42 = vld [vmem:[#allocation6 + $0x5c0] ss:$8 sps:$4 sm:$0xff]  }
 0x401   :  { %v6067_v58 = vpack.c.bf16 %v2137_v55, %v2135_v49  ;;  %3872 = vmatpush1.bf16.msra.mxu1 %v5209_v41  ;;  %v5286_v41 = vld [vmem:[#allocation6 + $0x5c4] ss:$8 sps:$4 sm:$0xff]   ;;  %v5289_v45 = vld [vmem:[#allocation6 + $0x5d4] ss:$8 sps:$4 sm:$0xff]   ;;  %v5290_v55 = vld [vmem:[#allocation6 + $0x5e0] ss:$8 sps:$4 sm:$0xff]  }
 0x402   :  { %3873 = vmatprep.subr.bf16.mxu1 %v5214_v34  ;;  %v5287_v34 = vld [vmem:[#allocation6 + $0x5d0] ss:$8 sps:$4 sm:$0xff]   ;;  %v5292_v49 = vld [vmem:[#allocation6 + $0x5e4] ss:$8 sps:$4 sm:$0xff]  }
 0x405   :  { %3874 = vmatpush1.bf16.msra.mxu1 %v5212_v59  ;;  %v5295_v59 = vld [vmem:[#allocation6 + $0x5f4] ss:$8 sps:$4 sm:$0xff]  }
 0x406   :  { %3875 = vmatprep.subr.bf16.mxu1 %v5217_v60  ;;  %v5293_v60 = vld [vmem:[#allocation6 + $0x5f0] ss:$8 sps:$4 sm:$0xff]  }
 0x409   :  { %3876 = vmatpush1.bf16.msra.mxu1 %v5215_v35  ;;  %v5298_v35 = vld [vmem:[#allocation6 + $0x604] ss:$8 sps:$4 sm:$0xff]  }
 0x40a   :  { %3877 = vmatprep.subr.bf16.mxu1 %v5220_v48  ;;  %v5296_v48 = vld [vmem:[#allocation6 + $0x600] ss:$8 sps:$4 sm:$0xff]  }
 0x40d   :  { %3878 = vmatpush1.bf16.msra.mxu1 %v5218_v61  ;;  %v5301_v61 = vld [vmem:[#allocation6 + $0x614] ss:$8 sps:$4 sm:$0xff]  }
 0x40e   :  { %3879 = vmatprep.subr.bf16.mxu1 %v5223_v62  ;;  %v5299_v62 = vld [vmem:[#allocation6 + $0x610] ss:$8 sps:$4 sm:$0xff]  }
 0x411   :  { %3880 = vmatpush1.bf16.msra.mxu1 %v5221_v1  ;;  %v5304_v1 = vld [vmem:[#allocation6 + $0x624] ss:$8 sps:$4 sm:$0xff]  }
 0x412   :  { %3881 = vmatprep.subr.bf16.mxu1 %v5226_v2  ;;  %v5302_v2 = vld [vmem:[#allocation6 + $0x620] ss:$8 sps:$4 sm:$0xff]  }
 0x415   :  { %3882 = vmatpush1.bf16.msra.mxu1 %v5224_v0  ;;  %v5307_v0 = vld [vmem:[#allocation6 + $0x634] ss:$8 sps:$4 sm:$0xff]  }
 0x416   :  { %3883 = vmatprep.subr.bf16.mxu1 %v5229_v3  ;;  %v5305_v3 = vld [vmem:[#allocation6 + $0x630] ss:$8 sps:$4 sm:$0xff]  }
 0x419   :  { %3884 = vmatpush1.bf16.msra.mxu1 %v5227_v51  ;;  %v5310_v51 = vld [vmem:[#allocation6 + $0x644] ss:$8 sps:$4 sm:$0xff]  }
 0x41a   :  { %3885 = vmatprep.subr.bf16.mxu1 %v5232_v6  ;;  %v5308_v6 = vld [vmem:[#allocation6 + $0x640] ss:$8 sps:$4 sm:$0xff]  }
 0x41d   :  { %3886 = vmatpush1.bf16.msra.mxu1 %v5230_v53  ;;  %v5313_v53 = vld [vmem:[#allocation6 + $0x654] ss:$8 sps:$4 sm:$0xff]  }
 0x41e   :  { %3887 = vmatprep.subr.bf16.mxu1 %v5235_v7  ;;  %v5316_v7 = vld [vmem:[#allocation6 + $0x664] ss:$8 sps:$4 sm:$0xff]  }
 0x421   :  { %3888 = vmatpush1.bf16.msra.mxu1 %v5233_v8  ;;  %v5319_v8 = vld [vmem:[#allocation6 + $0x674] ss:$8 sps:$4 sm:$0xff]  }
 0x422   :  { %3889 = vmatprep.subr.bf16.mxu1 %v5238_v10  ;;  %v5317_v10 = vld [vmem:[#allocation6 + $0x670] ss:$8 sps:$4 sm:$0xff]  }
 0x425   :  { %3890 = vmatpush1.bf16.msra.mxu1 %v5236_v11  ;;  %v5322_v11 = vld [vmem:[#allocation6 + $0x684] ss:$8 sps:$4 sm:$0xff]  }
 0x426   :  { %3891 = vmatprep.subr.bf16.mxu1 %v5241_v4  ;;  %v5320_v4 = vld [vmem:[#allocation6 + $0x680] ss:$8 sps:$4 sm:$0xff]  }
 0x429   :  { %3892 = vmatpush1.bf16.msra.mxu1 %v5239_v19  ;;  %v5325_v19 = vld [vmem:[#allocation6 + $0x694] ss:$8 sps:$4 sm:$0xff]  }
 0x42a   :  { %3893 = vmatprep.subr.bf16.mxu1 %v5244_v12  ;;  %v5323_v12 = vld [vmem:[#allocation6 + $0x690] ss:$8 sps:$4 sm:$0xff]  }
 0x42d   :  { %3894 = vmatpush1.bf16.msra.mxu1 %v5242_v13  ;;  %v5328_v13 = vld [vmem:[#allocation6 + $0x6a4] ss:$8 sps:$4 sm:$0xff]  }
 0x42e   :  { %3895 = vmatprep.subr.bf16.mxu1 %v5247_v18  ;;  %v5326_v18 = vld [vmem:[#allocation6 + $0x6a0] ss:$8 sps:$4 sm:$0xff]  }
 0x431   :  { %3896 = vmatpush1.bf16.msra.mxu1 %v5245_v33  ;;  %v5331_v33 = vld [vmem:[#allocation6 + $0x6b4] ss:$8 sps:$4 sm:$0xff]  }
 0x432   :  { %3908 = vmatprep.subr.bf16.mxu1 %v5250_v16  ;;  %v5329_v16 = vld [vmem:[#allocation6 + $0x6b0] ss:$8 sps:$4 sm:$0xff]  }
 0x434   :  { %3898 = vmatmul.mubr.bf16.vlgmr.msra.gmra.mrb[0].mxu1 %v6042_v63 }
 0x435   :  { %3909 = vmatpush1.bf16.msra.mxu1 %v5248_v32  ;;  %3940 = vmatprep.mubr.bf16.mxu1 %v6050_v15  ;;  %v5334_v32 = vld [vmem:[#allocation6 + $0x6c4] ss:$8 sps:$4 sm:$0xff]  }
 0x436   :  { %3910 = vmatprep.subr.bf16.mxu1 %v5253_v47  ;;  %v5332_v47 = vld [vmem:[#allocation6 + $0x6c0] ss:$8 sps:$4 sm:$0xff]  }
 0x439   :  { %3911 = vmatpush1.bf16.msra.mxu1 %v5251_v17  ;;  %v5337_v17 = vld [vmem:[#allocation6 + $0x6d4] ss:$8 sps:$4 sm:$0xff]  }
 0x43a   :  { %3912 = vmatprep.subr.bf16.mxu1 %v5256_v20  ;;  %v5335_v20 = vld [vmem:[#allocation6 + $0x6d0] ss:$8 sps:$4 sm:$0xff]  }
 0x43d   :  { %3913 = vmatpush1.bf16.msra.mxu1 %v5254_v21  ;;  %v5340_v21 = vld [vmem:[#allocation6 + $0x6e4] ss:$8 sps:$4 sm:$0xff]  }
 0x43e   :  { %3914 = vmatprep.subr.bf16.mxu1 %v5259_v23  ;;  %v5338_v23 = vld [vmem:[#allocation6 + $0x6e0] ss:$8 sps:$4 sm:$0xff]  }
 0x43f   :  { %v6071_v24 = vpop.f32.mrb[80].mxu0 }
 0x440   :  { %v6073_v25 = vpop.f32.mrb[81].mxu0 }
 0x441   :  { %3915 = vmatpush1.bf16.msra.mxu1 %v5257_v5  ;;  %v6075_v63 = vpop.f32.mrb[82].mxu0  ;;  %v5343_v5 = vld [vmem:[#allocation6 + $0x6f4] ss:$8 sps:$4 sm:$0xff]  }
 0x442   :  { %v6077_v15 = vpop.f32.mrb[83].mxu0  ;;  %3916 = vmatprep.subr.bf16.mxu1 %v5262_v9  ;;  %v5341_v9 = vld [vmem:[#allocation6 + $0x6f0] ss:$8 sps:$4 sm:$0xff]  }
 0x445   :  { %3917 = vmatpush1.bf16.msra.mxu1 %v5260_v54  ;;  %v5346_v54 = vld [vmem:[#allocation6 + $0x704] ss:$8 sps:$4 sm:$0xff]  }
 0x446   :  { %3918 = vmatprep.subr.bf16.mxu1 %v5265_v46  ;;  %v5344_v46 = vld [vmem:[#allocation6 + $0x700] ss:$8 sps:$4 sm:$0xff]  }
 0x449   :  { %3919 = vmatpush1.bf16.msra.mxu1 %v5263_v26  ;;  %v5349_v26 = vld [vmem:[#allocation6 + $0x714] ss:$8 sps:$4 sm:$0xff]  }
 0x44a   :  { %3920 = vmatprep.subr.bf16.mxu1 %v5268_v27  ;;  %v5347_v27 = vld [vmem:[#allocation6 + $0x710] ss:$8 sps:$4 sm:$0xff]  }
 0x44d   :  { %3921 = vmatpush1.bf16.msra.mxu1 %v5266_v28  ;;  %v5352_v28 = vld [vmem:[#allocation6 + $0x724] ss:$8 sps:$4 sm:$0xff]  }
 0x44e   :  { %3922 = vmatprep.subr.bf16.mxu1 %v5271_v29  ;;  %v5350_v29 = vld [vmem:[#allocation6 + $0x720] ss:$8 sps:$4 sm:$0xff]  }
 0x451   :  { %3923 = vmatpush1.bf16.msra.mxu1 %v5269_v30  ;;  %v5355_v30 = vld [vmem:[#allocation6 + $0x734] ss:$8 sps:$4 sm:$0xff]  }
 0x452   :  { %3924 = vmatprep.subr.bf16.mxu1 %v5274_v56  ;;  %v5353_v56 = vld [vmem:[#allocation6 + $0x730] ss:$8 sps:$4 sm:$0xff]  }
 0x455   :  { %3925 = vmatpush1.bf16.msra.mxu1 %v5272_v31  ;;  %v5358_v31 = vld [vmem:[#allocation6 + $0x744] ss:$8 sps:$4 sm:$0xff]  }
 0x456   :  { %3926 = vmatprep.subr.bf16.mxu1 %v5277_v36  ;;  %v5356_v36 = vld [vmem:[#allocation6 + $0x740] ss:$8 sps:$4 sm:$0xff]  }
 0x459   :  { %3927 = vmatpush1.bf16.msra.mxu1 %v5275_v43  ;;  %v5361_v43 = vld [vmem:[#allocation6 + $0x754] ss:$8 sps:$4 sm:$0xff]  }
 0x45a   :  { %3928 = vmatprep.subr.bf16.mxu1 %v5280_v37  ;;  %v5364_v37 = vld [vmem:[#allocation6 + $0x764] ss:$8 sps:$4 sm:$0xff]  }
 0x45d   :  { %3929 = vmatpush1.bf16.msra.mxu1 %v5278_v38  ;;  %v5367_v38 = vld [vmem:[#allocation6 + $0x774] ss:$8 sps:$4 sm:$0xff]  }
 0x45e   :  { %3930 = vmatprep.subr.bf16.mxu1 %v5283_v39  ;;  %v5365_v39 = vld [vmem:[#allocation6 + $0x770] ss:$8 sps:$4 sm:$0xff]  }
 0x461   :  { %3931 = vmatpush1.bf16.msra.mxu1 %v5281_v40  ;;  %v5370_v40 = vld [vmem:[#allocation6 + $0x784] ss:$8 sps:$4 sm:$0xff]  }
 0x462   :  { %3932 = vmatprep.subr.bf16.mxu1 %v5286_v41  ;;  %v5368_v41 = vld [vmem:[#allocation6 + $0x780] ss:$8 sps:$4 sm:$0xff]  }
 0x465   :  { %3933 = vmatpush1.bf16.msra.mxu1 %v5284_v42  ;;  %v5373_v42 = vld [vmem:[#allocation6 + $0x794] ss:$8 sps:$4 sm:$0xff]  }
 0x466   :  { %3934 = vmatprep.subr.bf16.mxu1 %v5289_v45  ;;  %v5371_v45 = vld [vmem:[#allocation6 + $0x790] ss:$8 sps:$4 sm:$0xff]  }
 0x469   :  { %3935 = vmatpush1.bf16.msra.mxu1 %v5287_v34  ;;  %v5376_v34 = vld [vmem:[#allocation6 + $0x7a4] ss:$8 sps:$4 sm:$0xff]  }
 0x46a   :  { %3936 = vmatprep.subr.bf16.mxu1 %v5292_v49  ;;  %v5374_v49 = vld [vmem:[#allocation6 + $0x7a0] ss:$8 sps:$4 sm:$0xff]  }
 0x46d   :  { %3937 = vmatpush1.bf16.msra.mxu1 %v5290_v55  ;;  %v5379_v55 = vld [vmem:[#allocation6 + $0x7b4] ss:$8 sps:$4 sm:$0xff]  }
 0x46e   :  { %3938 = vmatprep.subr.bf16.mxu1 %v5295_v59  ;;  %v5377_v59 = vld [vmem:[#allocation6 + $0x7b0] ss:$8 sps:$4 sm:$0xff]  }
 0x471   :  { %3939 = vmatpush1.bf16.msra.mxu1 %v5293_v60  ;;  %v5382_v60 = vld [vmem:[#allocation6 + $0x7c4] ss:$8 sps:$4 sm:$0xff]  }
 0x472   :  { %3951 = vmatprep.subr.bf16.mxu1 %v5298_v35  ;;  %v5380_v35 = vld [vmem:[#allocation6 + $0x7c0] ss:$8 sps:$4 sm:$0xff]  }
 0x474   :  { %3941 = vmatmul.mubr.bf16.vlgmr.msra.gmra.mrb[0].mxu1 %v6048_v14  ;;  %v5311_v14 = vld [vmem:[#allocation6 + $0x650] ss:$8 sps:$4 sm:$0xff]  }
 0x475   :  { %3952 = vmatpush1.bf16.msra.mxu1 %v5296_v48  ;;  %3983 = vmatprep.mubr.bf16.mxu1 %v6059_v44  ;;  %v5314_v44 = vld [vmem:[#allocation6 + $0x660] ss:$8 sps:$4 sm:$0xff]   ;;  %v5385_v48 = vld [vmem:[#allocation6 + $0x7d4] ss:$8 sps:$4 sm:$0xff]  }
 0x476   :  { %3953 = vmatprep.subr.bf16.mxu1 %v5301_v61  ;;  %v5383_v61 = vld [vmem:[#allocation6 + $0x7d0] ss:$8 sps:$4 sm:$0xff]  }
 0x479   :  { %3954 = vmatpush1.bf16.msra.mxu1 %v5299_v62  ;;  %v5388_v62 = vld [vmem:[#allocation6 + $0x7e4] ss:$8 sps:$4 sm:$0xff]  }
 0x47a   :  { %3955 = vmatprep.subr.bf16.mxu1 %v5304_v1  ;;  %v5386_v1 = vld [vmem:[#allocation6 + $0x7e0] ss:$8 sps:$4 sm:$0xff]  }
 0x47d   :  { %3956 = vmatpush1.bf16.msra.mxu1 %v5302_v2  ;;  %v5391_v2 = vld [vmem:[#allocation6 + $0x7f4] ss:$8 sps:$4 sm:$0xff]  }
 0x47e   :  { %3957 = vmatprep.subr.bf16.mxu1 %v5307_v0  ;;  %v5389_v0 = vld [vmem:[#allocation6 + $0x7f0] ss:$8 sps:$4 sm:$0xff]  }
 0x481   :  { %3958 = vmatpush1.bf16.msra.mxu1 %v5305_v3  ;;  %v4079_v3 = vld [vmem:[%s6104_s5 + $0x3] ss:$4 sm:$0x3] }
 0x482   :  { %3959 = vmatprep.subr.bf16.mxu1 %v5310_v51  ;;  %v2406_v51 = vrot.slane %v4079_v3, %v5677_v50 }
 0x485   :  { %3960 = vmatpush1.bf16.msra.mxu1 %v5308_v6  ;;  %v2410_v6 = vrot.slane %v4079_v3, %v5682_v52 }
 0x486   :  { %3961 = vmatprep.subr.bf16.mxu1 %v5313_v53  ;;  %v3728_v53 = vadd.f32 %v6071_v24, %v2406_v51 }
 0x489   :  { %3962 = vmatpush1.bf16.msra.mxu1 %v5311_v14  ;;  %v3730_v14 = vadd.f32 %v6073_v25, %v2410_v6 }
 0x48a   :  { %3963 = vmatprep.subr.bf16.mxu1 %v5316_v7 }
 0x48d   :  { %3964 = vmatpush1.bf16.msra.mxu1 %v5314_v44  ;;  %v3732_v44 = vadd.f32 %v6075_v63, %v2406_v51 }
 0x48e   :  { %3965 = vmatprep.subr.bf16.mxu1 %v5319_v8 }
 0x491   :  { %3966 = vmatpush1.bf16.msra.mxu1 %v5317_v10 }
 0x492   :  { %3967 = vmatprep.subr.bf16.mxu1 %v5322_v11  ;;  %v3734_v11 = vadd.f32 %v6077_v15, %v2410_v6 }
 0x495   :  { %3968 = vmatpush1.bf16.msra.mxu1 %v5320_v4 }
 0x496   :  { %3969 = vmatprep.subr.bf16.mxu1 %v5325_v19 }
 0x499   :  { %3970 = vmatpush1.bf16.msra.mxu1 %v5323_v12 }
 0x49a   :  { %3971 = vmatprep.subr.bf16.mxu1 %v5328_v13 }
 0x49d   :  { %3972 = vmatpush1.bf16.msra.mxu1 %v5326_v18 }
 0x49e   :  { %3973 = vmatprep.subr.bf16.mxu1 %v5331_v33 }
 0x4a1   :  { %3974 = vmatpush1.bf16.msra.mxu1 %v5329_v16 }
 0x4a2   :  { %3975 = vmatprep.subr.bf16.mxu1 %v5334_v32 }
 0x4a5   :  { %3976 = vmatpush1.bf16.msra.mxu1 %v5332_v47 }
 0x4a6   :  { %3977 = vmatprep.subr.bf16.mxu1 %v5337_v17 }
 0x4a9   :  { %3978 = vmatpush1.bf16.msra.mxu1 %v5335_v20 }
 0x4aa   :  { %3979 = vmatprep.subr.bf16.mxu1 %v5340_v21 }
 0x4ad   :  { %3980 = vmatpush1.bf16.msra.mxu1 %v5338_v23 }
 0x4ae   :  { %3981 = vmatprep.subr.bf16.mxu1 %v5343_v5 }
 0x4b1   :  { %3982 = vmatpush1.bf16.msra.mxu1 %v5341_v9 }
 0x4b2   :  { %3994 = vmatprep.subr.bf16.mxu1 %v5346_v54 }
 0x4b4   :  { %3984 = vmatmul.mubr.bf16.vlgmr.msra.gmra.mrb[0].mxu1 %v6057_v22  ;;  %v5359_v22 = vld [vmem:[#allocation6 + $0x750] ss:$8 sps:$4 sm:$0xff]  }
 0x4b5   :  { %3995 = vmatpush1.bf16.msra.mxu1 %v5344_v46  ;;  %4026 = vmatprep.mubr.bf16.mxu1 %v6067_v58  ;;  %v5362_v58 = vld [vmem:[#allocation6 + $0x760] ss:$8 sps:$4 sm:$0xff]  }
 0x4b6   :  { %3996 = vmatprep.subr.bf16.mxu1 %v5349_v26 }
 0x4b9   :  { %3997 = vmatpush1.bf16.msra.mxu1 %v5347_v27 }
 0x4ba   :  { %3998 = vmatprep.subr.bf16.mxu1 %v5352_v28 }
 0x4bd   :  { %3999 = vmatpush1.bf16.msra.mxu1 %v5350_v29 }
 0x4be   :  { %4000 = vmatprep.subr.bf16.mxu1 %v5355_v30 }
 0x4c1   :  { %4001 = vmatpush1.bf16.msra.mxu1 %v5353_v56 }
 0x4c2   :  { %4002 = vmatprep.subr.bf16.mxu1 %v5358_v31 }
 0x4c5   :  { %4003 = vmatpush1.bf16.msra.mxu1 %v5356_v36 }
 0x4c6   :  { %4004 = vmatprep.subr.bf16.mxu1 %v5361_v43 }
 0x4c9   :  { %4005 = vmatpush1.bf16.msra.mxu1 %v5359_v22 }
 0x4ca   :  { %4006 = vmatprep.subr.bf16.mxu1 %v5364_v37 }
 0x4cd   :  { %4007 = vmatpush1.bf16.msra.mxu1 %v5362_v58 }
 0x4ce   :  { %4008 = vmatprep.subr.bf16.mxu1 %v5367_v38 }
 0x4d1   :  { %4009 = vmatpush1.bf16.msra.mxu1 %v5365_v39 }
 0x4d2   :  { %4010 = vmatprep.subr.bf16.mxu1 %v5370_v40 }
 0x4d5   :  { %4011 = vmatpush1.bf16.msra.mxu1 %v5368_v41 }
 0x4d6   :  { %4012 = vmatprep.subr.bf16.mxu1 %v5373_v42 }
 0x4d9   :  { %4013 = vmatpush1.bf16.msra.mxu1 %v5371_v45 }
 0x4da   :  { %4014 = vmatprep.subr.bf16.mxu1 %v5376_v34 }
 0x4dd   :  { %4015 = vmatpush1.bf16.msra.mxu1 %v5374_v49 }
 0x4de   :  { %4016 = vmatprep.subr.bf16.mxu1 %v5379_v55 }
 0x4e1   :  { %4017 = vmatpush1.bf16.msra.mxu1 %v5377_v59 }
 0x4e2   :  { %4018 = vmatprep.subr.bf16.mxu1 %v5382_v60 }
 0x4e5   :  { %4019 = vmatpush1.bf16.msra.mxu1 %v5380_v35 }
 0x4e6   :  { %4020 = vmatprep.subr.bf16.mxu1 %v5385_v48 }
 0x4e9   :  { %4021 = vmatpush1.bf16.msra.mxu1 %v5383_v61 }
 0x4ea   :  { %4022 = vmatprep.subr.bf16.mxu1 %v5388_v62 }
 0x4ed   :  { %4023 = vmatpush1.bf16.msra.mxu1 %v5386_v1 }
 0x4ee   :  { %4024 = vmatprep.subr.bf16.mxu1 %v5391_v2 }
 0x4f1   :  { %4025 = vmatpush1.bf16.msra.mxu1 %v5389_v0 }
 0x4f4   :  { %4027 = vmatmul.mubr.bf16.vlgmr.msra.gmra.mrb[0].mxu1 %v6065_v57 }
 0x5c7   :  { %v4028_v7 = vpop.f32.mrb[0].mxu1 }
 0x5c8   :  { %v4619_v8 = vadd.f32 %v4028_v7, %v3728_v53  ;;  %v4030_v10 = vpop.f32.mrb[1].mxu1 }
 0x5c9   :  { %v4621_v57 = vadd.f32 %v4030_v10, %v3730_v14  ;;  %v4032_v4 = vpop.f32.mrb[2].mxu1 }
 0x5ca   :  { %v4037_v19 = vsub.f32 0.0, %v4619_v8  ;;  %v4623_v12 = vadd.f32 %v4032_v4, %v3732_v44  ;;  %v4034_v13 = vpop.f32.mrb[3].mxu1 }
 0x5cb   :  { %v4038_v18 = vsub.f32 0.0, %v4621_v57  ;;  %v4625_v50 = vadd.f32 %v4034_v13, %v3734_v11 }
 0x5cc   :  { %v4041_v33 = vmul.f32 1.442695, %v4037_v19  ;;  %v4039_v52 = vsub.f32 0.0, %v4623_v12 }
 0x5cd   :  { %v4043_v16 = vmul.f32 1.442695, %v4038_v18  ;;  %v4040_v24 = vsub.f32 0.0, %v4625_v50 }
 0x5ce   :  { %5392 = vpow2.f32 %v4041_v33  ;;  %v4045_v25 = vmul.f32 1.442695, %v4039_v52 }
 0x5cf   :  { %5394 = vpow2.f32 %v4043_v16  ;;  %v4047_v32 = vmul.f32 1.442695, %v4040_v24 }
 0x5d0   :  { %5396 = vpow2.f32 %v4045_v25 }
 0x5d1   :  { %5398 = vpow2.f32 %v4047_v32 }
 0x5d8   :  { %v5393_v63 = vpop.eup %5392 }
 0x5d9   :  { %v5395_v47 = vpop.eup %5394  ;;  %v4049_v15 = vadd.f32 1.0, %v5393_v63 }
 0x5da   :  { %v5397_v17 = vpop.eup %5396  ;;  %v4050_v20 = vadd.f32 1.0, %v5395_v47 }
 0x5db   :  { %v5399_v21 = vpop.eup %5398  ;;  %5400 = vrcp.f32 %v4049_v15  ;;  %v4051_v23 = vadd.f32 1.0, %v5397_v17 }
 0x5dc   :  { %5402 = vrcp.f32 %v4050_v20  ;;  %v4052_v5 = vadd.f32 1.0, %v5399_v21 }
 0x5dd   :  { %5404 = vrcp.f32 %v4051_v23 }
 0x5de   :  { %5406 = vrcp.f32 %v4052_v5 }
 0x5e5   :  { %v5401_v9 = vpop.eup %5400 }
 0x5e6   :  { %v5403_v54 = vpop.eup %5402 }
 0x5e7   :  { %v5405_v46 = vpop.eup %5404  ;;  %v4616_v26 = vpack.c.bf16 %v5403_v54, %v5401_v9 }
 0x5e8   :  { %v5407_v27 = vpop.eup %5406 }
 0x5e9   :  { %4069 = vst [vmem:[%s6105_s6] sm:$0xff] %v4616_v26  ;;  %v4617_v28 = vpack.c.bf16 %v5407_v27, %v5405_v46 }
 0x5eb   :  { %4070 = vst [vmem:[%s6105_s6 + $0x8] sm:$0xff] %v4617_v28 }
 0x5ec   :  { %4075 = vsyncpa [#allocation5], 1 }
 0x5ed   :  { %4076 = vsyncpa [#allocation7], 1 }

</bundles_post_ra>
